<compile_context>
chip_gen: v7x
topology: tpu7x:2x2x1
jax: 0.10.0
libtpu: 0.0.40
codegen_flags: <defaults>
</compile_context>

<pallas_src>
import functools

import jax
import jax.numpy as jnp
import numpy as np
from jax.experimental import pallas as pl
from jax.experimental.pallas import tpu as pltpu

LEAKY_SLOPE = 0.2
BN_EPS = 1e-5
_MiB = 1024 * 1024


def _build_patch(x_ref, b, patch_ref, col0, colmasks, H, W):
    """im2col for one image, using only static contiguous slices.

    Writes the 9 shifted 3x3 taps of image `b` (x_ref[b] is (Cin, H*W), NCHW-flat)
    into patch_ref[:, col0:col0+H*W].  Patch rows are ordered (kh, kw, ci) to match
    the flattened conv weights.  Out-of-bounds strips are zero-filled explicitly
    (at most ~W+1 lanes per tap), the column wrap is masked with `colmasks`.
    """
    Cin = x_ref.shape[1]
    HW = H * W
    for t in range(9):
        dh, dw = t // 3 - 1, t % 3 - 1
        delta = dh * W + dw                       # flat-index shift of this tap
        lo, hi = max(0, -delta), HW - max(0, delta)
        r0, r1 = t * Cin, (t + 1) * Cin
        src = x_ref[b, :, lo + delta:hi + delta]  # (Cin, hi-lo) contiguous read
        if dw != 0:                               # mask the per-row column wrap
            src = jnp.where(colmasks[dw][:, lo:hi], src, 0.0)
        patch_ref[r0:r1, col0 + lo:col0 + hi] = src
        if lo > 0:                                # top out-of-bounds strip
            patch_ref[r0:r1, col0:col0 + lo] = jnp.zeros((Cin, lo), jnp.float32)
        if hi < HW:                               # bottom out-of-bounds strip
            patch_ref[r0:r1, col0 + hi:col0 + HW] = jnp.zeros((Cin, HW - hi), jnp.float32)


def _col_masks(H, W):
    """Lane masks (1, H*W) for the +1 / -1 horizontal taps (True = in bounds)."""
    HW = H * W
    col = jax.lax.broadcasted_iota(jnp.int32, (1, HW), 1) % W
    return {1: col < (W - 1), -1: col > 0}


def _conv_stats_kernel(x_ref, w_ref, ssum_ref, ssq_ref, patch_ref, *, H, W):
    """Pass 1 (NB images per grid step): fused conv GEMM + BN partial sums.

    x_ref     : (NB, Cin, H*W)   NCHW-flat input block
    w_ref     : (Cout, 9*Cin)    conv weights, cols ordered (kh, kw, ci)
    ssum_ref  : (Cout, 1)        per-step sum of conv activations
    ssq_ref   : (Cout, 1)        per-step sum of squared conv activations
    patch_ref : VMEM (9*Cin, NB*H*W) im2col scratch (lane-dense)
    """
    NB = x_ref.shape[0]
    HW = H * W
    colmasks = _col_masks(H, W)
    for b in range(NB):
        _build_patch(x_ref, b, patch_ref, b * HW, colmasks, H, W)

    # One fused MXU matmul; conv bias omitted (cancelled by BN mean subtraction).
    acc = jnp.dot(w_ref[...], patch_ref[...], preferred_element_type=jnp.float32)

    ssum_ref[...] = jnp.sum(acc, axis=1, keepdims=True)
    ssq_ref[...] = jnp.sum(acc * acc, axis=1, keepdims=True)


def _conv_bn_pool_kernel(x_ref, w_ref, scale_ref, shift_ref, o_ref, patch_ref, *, H, W):
    """Pass 2 (NB images per grid step): conv recompute + folded BN + LeakyReLU + pool.

    x_ref     : (NB, Cin, H*W)
    w_ref     : (Cout, 9*Cin)
    scale_ref : (Cout, 1)   gamma / sqrt(var + eps)
    shift_ref : (Cout, 1)   beta - mean * scale
    o_ref     : (NB, Cout, (H/2)*(W/2))  pooled output block (lane-dense-ish)
    patch_ref : VMEM (9*Cin, NB*H*W)
    """
    NB = x_ref.shape[0]
    Cout = w_ref.shape[0]
    HW = H * W
    H2, W2 = H // 2, W // 2

    colmasks = _col_masks(H, W)
    for b in range(NB):
        _build_patch(x_ref, b, patch_ref, b * HW, colmasks, H, W)

    acc = jnp.dot(w_ref[...], patch_ref[...], preferred_element_type=jnp.float32)

    # Folded BatchNorm affine + LeakyReLU(0.2) — lane-dense over (Cout, NB*H*W).
    y = acc * scale_ref[...] + shift_ref[...]
    y = jnp.where(y > 0, y, LEAKY_SLOPE * y)

    # 0/1 selection matrices for the stride-2 column pick of the 2x2 max pool
    # (tiny (W, W/2) matmuls on the MXU -> no lane-splitting reshapes needed).
    wi = jax.lax.broadcasted_iota(jnp.int32, (W, W2), 0)
    w2i = jax.lax.broadcasted_iota(jnp.int32, (W, W2), 1)
    sel_even = (wi == 2 * w2i).astype(jnp.float32)
    sel_odd = (wi == 2 * w2i + 1).astype(jnp.float32)

    for b in range(NB):
        base = b * HW
        for h2 in range(H2):
            seg = y[:, base + 2 * h2 * W: base + (2 * h2 + 2) * W]   # (Cout, 2W) = 2 rows
            rmax = jnp.maximum(seg[:, :W], seg[:, W:])               # pool over H
            pooled = jnp.maximum(                                     # pool + select over W
                jnp.dot(rmax, sel_even, preferred_element_type=jnp.float32),
                jnp.dot(rmax, sel_odd, preferred_element_type=jnp.float32))
            o_ref[b, :, h2 * W2:(h2 + 1) * W2] = pooled


def _pick_batch_block(n, bytes_per_image, budget_bytes=24 * _MiB, min_steps=4):
    """Largest divisor NB of n that keeps >= min(min_steps, n) grid steps and fits VMEM."""
    target_steps = min(min_steps, n)
    best = 1
    for nb in range(1, n + 1):
        if n % nb != 0:
            continue
        if n // nb < target_steps:
            break
        if nb * bytes_per_image > budget_bytes:
            break
        best = nb
    return best


@jax.jit
def encoder_block(x_nchw, w_oihw, bias, gamma, beta):
    """EncoderBlock forward. x_nchw: (N, Cin, H, W) -> (N, Cout, H//2, W//2).

    `bias` is accepted for API parity but unused: training-mode BatchNorm subtracts
    the batch mean immediately after the conv, so the bias cancels exactly.
    """
    del bias
    N, Cin, H, W = x_nchw.shape
    Cout = w_oihw.shape[0]
    assert H % 2 == 0 and W % 2 == 0
    H2, W2, HW, K = H // 2, W // 2, H * W, 9 * Cin

    # NCHW consumed directly; (N, Cin, H, W) -> (N, Cin, H*W) is a free reshape.
    x = x_nchw.astype(jnp.float32).reshape(N, Cin, HW)
    # (Cout, Cin, 3, 3) -> (Cout, 3, 3, Cin) -> (Cout, 9*Cin); col = kh*3*Cin + kw*Cin + ci
    w_flat = jnp.transpose(w_oihw, (0, 2, 3, 1)).astype(jnp.float32).reshape(Cout, K)

    # --- batch blocking + VMEM budget (per-step footprint, 48 MiB cap for v7x) ---
    bytes_per_image = 4 * HW * (2 * Cin + 9 * Cin + 2 * Cout) + 64 * 1024
    NB = _pick_batch_block(N, bytes_per_image)
    G = N // NB
    vmem_cap = int(min(48 * _MiB, max(16 * _MiB, 2 * NB * bytes_per_image + 2 * _MiB)))

    # ---------------- pass 1: conv GEMM + per-step BN partial sums ----------------
    ssum, ssq = pl.pallas_call(
        functools.partial(_conv_stats_kernel, H=H, W=W),
        grid=(G,),
        in_specs=[
            pl.BlockSpec((NB, Cin, HW), lambda g: (g, 0, 0)),
            pl.BlockSpec((Cout, K), lambda g: (0, 0)),
        ],
        out_specs=(
            pl.BlockSpec((None, Cout, 1), lambda g: (g, 0, 0)),
            pl.BlockSpec((None, Cout, 1), lambda g: (g, 0, 0)),
        ),
        out_shape=(
            jax.ShapeDtypeStruct((G, Cout, 1), jnp.float32),
            jax.ShapeDtypeStruct((G, Cout, 1), jnp.float32),
        ),
        scratch_shapes=[pltpu.VMEM((K, NB * HW), jnp.float32)],
        compiler_params=pltpu.CompilerParams(
            dimension_semantics=("parallel",),
            vmem_limit_bytes=vmem_cap,
        ),
    )(x, w_flat)

    # -------- finalize BN stats (global over N,H,W; biased variance, clamped) --------
    cnt = float(N * HW)
    mean = jnp.sum(ssum, axis=0) / cnt                                # (Cout, 1)
    var = jnp.maximum(jnp.sum(ssq, axis=0) / cnt - mean * mean, 0.0)  # E[x^2]-mean^2 >= 0
    inv_std = jax.lax.rsqrt(var + BN_EPS)
    scale = gamma.reshape(Cout, 1).astype(jnp.float32) * inv_std
    shift = beta.reshape(Cout, 1).astype(jnp.float32) - mean * scale

    # ------- pass 2: conv recompute + folded BN + LeakyReLU + 2x2 max pool -------
    out = pl.pallas_call(
        functools.partial(_conv_bn_pool_kernel, H=H, W=W),
        grid=(G,),
        in_specs=[
            pl.BlockSpec((NB, Cin, HW), lambda g: (g, 0, 0)),
            pl.BlockSpec((Cout, K), lambda g: (0, 0)),
            pl.BlockSpec((Cout, 1), lambda g: (0, 0)),
            pl.BlockSpec((Cout, 1), lambda g: (0, 0)),
        ],
        out_specs=pl.BlockSpec((NB, Cout, H2 * W2), lambda g: (g, 0, 0)),
        out_shape=jax.ShapeDtypeStruct((N, Cout, H2 * W2), jnp.float32),
        scratch_shapes=[pltpu.VMEM((K, NB * HW), jnp.float32)],
        compiler_params=pltpu.CompilerParams(
            dimension_semantics=("parallel",),
            vmem_limit_bytes=vmem_cap,
        ),
    )(x, w_flat, scale, shift)

    # Free reshape: split the fused H2*W2 minor dim -> NCHW output.
    return out.reshape(N, Cout, H2, W2)


def encoder_block_ref(x_nchw, w_oihw, bias, gamma, beta):
    """Pure-JAX reference (matches PyTorch training-mode forward)."""
    y = jax.lax.conv_general_dilated(
        x_nchw, w_oihw, window_strides=(1, 1), padding=((1, 1), (1, 1)),
        dimension_numbers=("NCHW", "OIHW", "NCHW"))
    y = y + bias[None, :, None, None]
    mean = jnp.mean(y, axis=(0, 2, 3), keepdims=True)
    var = jnp.mean((y - mean) ** 2, axis=(0, 2, 3), keepdims=True)
    y = (y - mean) / jnp.sqrt(var + BN_EPS)
    y = y * gamma[None, :, None, None] + beta[None, :, None, None]
    y = jnp.where(y > 0, y, LEAKY_SLOPE * y)
    N, C, H, W = y.shape
    return y.reshape(N, C, H // 2, 2, W // 2, 2).max(axis=(3, 5))


if __name__ == "__main__":
    N, Cin, Cout, H, W = 2, 4, 8, 16, 16
    key = jax.random.PRNGKey(0)
    kx, kw, kb, kg, kbe = jax.random.split(key, 5)

    x = jax.random.normal(kx, (N, Cin, H, W), dtype=jnp.float32)
    w = 0.1 * jax.random.normal(kw, (Cout, Cin, 3, 3), dtype=jnp.float32)
    b = 0.1 * jax.random.normal(kb, (Cout,), dtype=jnp.float32)
    gamma = 1.0 + 0.1 * jax.random.normal(kg, (Cout,), dtype=jnp.float32)
    beta = 0.1 * jax.random.normal(kbe, (Cout,), dtype=jnp.float32)

    out = jax.block_until_ready(encoder_block(x, w, b, gamma, beta))
    ref = jax.block_until_ready(encoder_block_ref(x, w, b, gamma, beta))

    assert out.shape == (N, Cout, H // 2, W // 2)
    np.testing.assert_allclose(np.asarray(out), np.asarray(ref), rtol=5e-4, atol=5e-4)
    print("KERNEL_OK")
</pallas_src>

<mosaic_0001>
module attributes {stable_mosaic.version = 11 : i64} {
  func.func @_conv_stats_kernel(%arg0: i32, %arg1: memref<1x4x256xf32, #tpu.memory_space<vmem>>, %arg2: memref<8x36xf32, #tpu.memory_space<vmem>>, %arg3: memref<1x8x1xf32, #tpu.memory_space<vmem>>, %arg4: memref<1x8x1xf32, #tpu.memory_space<vmem>>, %arg5: memref<36x256xf32, #tpu.memory_space<vmem>>) attributes {dimension_semantics = [#tpu.dimension_semantics<parallel>], iteration_bounds = array<i64: 2>, scalar_prefetch = 0 : i64, scratch_operands = 1 : i64, tpu.core_type = #tpu.core_type<tc>, window_params = [{transform_indices = @transform_0, window_bounds = array<i64: 1, 4, 256>}, {pipeline_mode = #tpu.pipeline_mode<synchronous>, transform_indices = @transform_1, window_bounds = array<i64: 8, 36>}, {transform_indices = @transform_2, window_bounds = array<i64: 1, 8, 1>}, {transform_indices = @transform_3, window_bounds = array<i64: 1, 8, 1>}]} {
    %0 = tpu.iota {dimensions = array<i32: 1>} : vector<1x256xi32>
    %c16_i32 = arith.constant 16 : i32
    %c0_i32 = arith.constant 0 : i32
    %1 = arith.cmpi eq, %c16_i32, %c0_i32 : i32
    %c1_i32 = arith.constant 1 : i32
    %2 = arith.select %1, %c1_i32, %c16_i32 : i32
    %3 = vector.broadcast %2 : i32 to vector<1x256xi32>
    %4 = arith.remsi %0, %3 : vector<1x256xi32>
    %c0_i32_0 = arith.constant 0 : i32
    %5 = vector.broadcast %c0_i32_0 : i32 to vector<1x256xi32>
    %6 = arith.cmpi ne, %4, %5 : vector<1x256xi32>
    %c0_i32_1 = arith.constant 0 : i32
    %7 = vector.broadcast %c0_i32_1 : i32 to vector<1x256xi32>
    %8 = arith.cmpi slt, %4, %7 : vector<1x256xi32>
    %c0_i32_2 = arith.constant 0 : i32
    %9 = arith.cmpi slt, %2, %c0_i32_2 : i32
    %10 = vector.broadcast %9 : i1 to vector<1x256xi1>
    %11 = vector.broadcast %10 : vector<1x256xi1> to vector<1x256xi1>
    %12 = arith.xori %8, %11 : vector<1x256xi1>
    %13 = arith.andi %12, %6 : vector<1x256xi1>
    %14 = vector.broadcast %2 : i32 to vector<1x256xi32>
    %15 = arith.addi %4, %14 : vector<1x256xi32>
    %16 = arith.select %13, %15, %4 : vector<1x256xi1>, vector<1x256xi32>
    %c15_i32 = arith.constant 15 : i32
    %17 = vector.broadcast %c15_i32 : i32 to vector<1x256xi32>
    %18 = arith.cmpi slt, %16, %17 : vector<1x256xi32>
    %c0_i32_3 = arith.constant 0 : i32
    %19 = vector.broadcast %c0_i32_3 : i32 to vector<1x256xi32>
    %20 = arith.cmpi sgt, %16, %19 : vector<1x256xi32>
    %c0 = arith.constant 0 : index
    %c0_4 = arith.constant 0 : index
    %c0_5 = arith.constant 0 : index
    %21 = vector.load %arg1[%c0, %c0_4, %c0_5] : memref<1x4x256xf32, #tpu.memory_space<vmem>>, vector<1x4x239xf32>
    %22 = vector.shape_cast %21 : vector<1x4x239xf32> to vector<4x239xf32>
    %23 = vector.extract_strided_slice %20 {offsets = [0, 17], sizes = [1, 239], strides = [1, 1]} : vector<1x256xi1> to vector<1x239xi1>
    %cst = arith.constant 0.000000e+00 : f32
    %24 = vector.shape_cast %23 : vector<1x239xi1> to vector<1x239xi1>
    %25 = vector.broadcast %24 : vector<1x239xi1> to vector<4x239xi1>
    %26 = vector.broadcast %cst : f32 to vector<4x239xf32>
    %27 = arith.select %25, %22, %26 : vector<4x239xi1>, vector<4x239xf32>
    %c0_6 = arith.constant 0 : index
    %c17 = arith.constant 17 : index
    %28 = vector.load %arg5[%c0_6, %c17] : memref<36x256xf32, #tpu.memory_space<vmem>>, vector<4x239xf32>
    tpu.vector_store %arg5[%c0_6, %c17], %27 {strides = array<i32>} : memref<36x256xf32, #tpu.memory_space<vmem>>, vector<4x239xf32>,
    %cst_7 = arith.constant 0.000000e+00 : f32
    %29 = vector.broadcast %cst_7 : f32 to vector<4x17xf32>
    %c0_8 = arith.constant 0 : index
    %c0_9 = arith.constant 0 : index
    %30 = vector.load %arg5[%c0_8, %c0_9] : memref<36x256xf32, #tpu.memory_space<vmem>>, vector<4x17xf32>
    tpu.vector_store %arg5[%c0_8, %c0_9], %29 {strides = array<i32>} : memref<36x256xf32, #tpu.memory_space<vmem>>, vector<4x17xf32>,
    %c0_10 = arith.constant 0 : index
    %c0_11 = arith.constant 0 : index
    %c0_12 = arith.constant 0 : index
    %31 = vector.load %arg1[%c0_10, %c0_11, %c0_12] : memref<1x4x256xf32, #tpu.memory_space<vmem>>, vector<1x4x240xf32>
    %32 = vector.shape_cast %31 : vector<1x4x240xf32> to vector<4x240xf32>
    %c4 = arith.constant 4 : index
    %c16 = arith.constant 16 : index
    %33 = vector.load %arg5[%c4, %c16] : memref<36x256xf32, #tpu.memory_space<vmem>>, vector<4x240xf32>
    tpu.vector_store %arg5[%c4, %c16], %32 {strides = array<i32>} : memref<36x256xf32, #tpu.memory_space<vmem>>, vector<4x240xf32>,
    %cst_13 = arith.constant 0.000000e+00 : f32
    %34 = vector.broadcast %cst_13 : f32 to vector<4x16xf32>
    %c4_14 = arith.constant 4 : index
    %c0_15 = arith.constant 0 : index
    %35 = vector.load %arg5[%c4_14, %c0_15] : memref<36x256xf32, #tpu.memory_space<vmem>>, vector<4x16xf32>
    tpu.vector_store %arg5[%c4_14, %c0_15], %34 {strides = array<i32>} : memref<36x256xf32, #tpu.memory_space<vmem>>, vector<4x16xf32>,
    %c0_16 = arith.constant 0 : index
    %c0_17 = arith.constant 0 : index
    %c0_18 = arith.constant 0 : index
    %36 = vector.load %arg1[%c0_16, %c0_17, %c0_18] : memref<1x4x256xf32, #tpu.memory_space<vmem>>, vector<1x4x241xf32>
    %37 = vector.shape_cast %36 : vector<1x4x241xf32> to vector<4x241xf32>
    %38 = vector.extract_strided_slice %18 {offsets = [0, 15], sizes = [1, 241], strides = [1, 1]} : vector<1x256xi1> to vector<1x241xi1>
    %cst_19 = arith.constant 0.000000e+00 : f32
    %39 = vector.shape_cast %38 : vector<1x241xi1> to vector<1x241xi1>
    %40 = vector.broadcast %39 : vector<1x241xi1> to vector<4x241xi1>
    %41 = vector.broadcast %cst_19 : f32 to vector<4x241xf32>
    %42 = arith.select %40, %37, %41 : vector<4x241xi1>, vector<4x241xf32>
    %c8 = arith.constant 8 : index
    %c15 = arith.constant 15 : index
    %43 = vector.load %arg5[%c8, %c15] : memref<36x256xf32, #tpu.memory_space<vmem>>, vector<4x241xf32>
    tpu.vector_store %arg5[%c8, %c15], %42 {strides = array<i32>} : memref<36x256xf32, #tpu.memory_space<vmem>>, vector<4x241xf32>,
    %cst_20 = arith.constant 0.000000e+00 : f32
    %44 = vector.broadcast %cst_20 : f32 to vector<4x15xf32>
    %c8_21 = arith.constant 8 : index
    %c0_22 = arith.constant 0 : index
    %45 = vector.load %arg5[%c8_21, %c0_22] : memref<36x256xf32, #tpu.memory_space<vmem>>, vector<4x15xf32>
    tpu.vector_store %arg5[%c8_21, %c0_22], %44 {strides = array<i32>} : memref<36x256xf32, #tpu.memory_space<vmem>>, vector<4x15xf32>,
    %c0_23 = arith.constant 0 : index
    %c0_24 = arith.constant 0 : index
    %c0_25 = arith.constant 0 : index
    %46 = vector.load %arg1[%c0_23, %c0_24, %c0_25] : memref<1x4x256xf32, #tpu.memory_space<vmem>>, vector<1x4x255xf32>
    %47 = vector.shape_cast %46 : vector<1x4x255xf32> to vector<4x255xf32>
    %48 = vector.extract_strided_slice %20 {offsets = [0, 1], sizes = [1, 255], strides = [1, 1]} : vector<1x256xi1> to vector<1x255xi1>
    %cst_26 = arith.constant 0.000000e+00 : f32
    %49 = vector.shape_cast %48 : vector<1x255xi1> to vector<1x255xi1>
    %50 = vector.broadcast %49 : vector<1x255xi1> to vector<4x255xi1>
    %51 = vector.broadcast %cst_26 : f32 to vector<4x255xf32>
    %52 = arith.select %50, %47, %51 : vector<4x255xi1>, vector<4x255xf32>
    %c12 = arith.constant 12 : index
    %c1 = arith.constant 1 : index
    %53 = vector.load %arg5[%c12, %c1] : memref<36x256xf32, #tpu.memory_space<vmem>>, vector<4x255xf32>
    tpu.vector_store %arg5[%c12, %c1], %52 {strides = array<i32>} : memref<36x256xf32, #tpu.memory_space<vmem>>, vector<4x255xf32>,
    %cst_27 = arith.constant 0.000000e+00 : f32
    %54 = vector.broadcast %cst_27 : f32 to vector<4x1xf32>
    %c12_28 = arith.constant 12 : index
    %c0_29 = arith.constant 0 : index
    %55 = vector.load %arg5[%c12_28, %c0_29] : memref<36x256xf32, #tpu.memory_space<vmem>>, vector<4x1xf32>
    tpu.vector_store %arg5[%c12_28, %c0_29], %54 {strides = array<i32>} : memref<36x256xf32, #tpu.memory_space<vmem>>, vector<4x1xf32>,
    %c0_30 = arith.constant 0 : index
    %c0_31 = arith.constant 0 : index
    %c0_32 = arith.constant 0 : index
    %56 = vector.load %arg1[%c0_30, %c0_31, %c0_32] : memref<1x4x256xf32, #tpu.memory_space<vmem>>, vector<1x4x256xf32>
    %57 = vector.shape_cast %56 : vector<1x4x256xf32> to vector<4x256xf32>
    %c16_33 = arith.constant 16 : index
    %c0_34 = arith.constant 0 : index
    %58 = vector.load %arg5[%c16_33, %c0_34] : memref<36x256xf32, #tpu.memory_space<vmem>>, vector<4x256xf32>
    tpu.vector_store %arg5[%c16_33, %c0_34], %57 {strides = array<i32>} : memref<36x256xf32, #tpu.memory_space<vmem>>, vector<4x256xf32>,
    %c0_35 = arith.constant 0 : index
    %c0_36 = arith.constant 0 : index
    %c1_37 = arith.constant 1 : index
    %59 = vector.load %arg1[%c0_35, %c0_36, %c1_37] : memref<1x4x256xf32, #tpu.memory_space<vmem>>, vector<1x4x255xf32>
    %60 = vector.shape_cast %59 : vector<1x4x255xf32> to vector<4x255xf32>
    %61 = vector.extract_strided_slice %18 {offsets = [0, 0], sizes = [1, 255], strides = [1, 1]} : vector<1x256xi1> to vector<1x255xi1>
    %cst_38 = arith.constant 0.000000e+00 : f32
    %62 = vector.shape_cast %61 : vector<1x255xi1> to vector<1x255xi1>
    %63 = vector.broadcast %62 : vector<1x255xi1> to vector<4x255xi1>
    %64 = vector.broadcast %cst_38 : f32 to vector<4x255xf32>
    %65 = arith.select %63, %60, %64 : vector<4x255xi1>, vector<4x255xf32>
    %c20 = arith.constant 20 : index
    %c0_39 = arith.constant 0 : index
    %66 = vector.load %arg5[%c20, %c0_39] : memref<36x256xf32, #tpu.memory_space<vmem>>, vector<4x255xf32>
    tpu.vector_store %arg5[%c20, %c0_39], %65 {strides = array<i32>} : memref<36x256xf32, #tpu.memory_space<vmem>>, vector<4x255xf32>,
    %cst_40 = arith.constant 0.000000e+00 : f32
    %67 = vector.broadcast %cst_40 : f32 to vector<4x1xf32>
    %c20_41 = arith.constant 20 : index
    %c255 = arith.constant 255 : index
    %68 = vector.load %arg5[%c20_41, %c255] : memref<36x256xf32, #tpu.memory_space<vmem>>, vector<4x1xf32>
    tpu.vector_store %arg5[%c20_41, %c255], %67 {strides = array<i32>} : memref<36x256xf32, #tpu.memory_space<vmem>>, vector<4x1xf32>,
    %c0_42 = arith.constant 0 : index
    %c0_43 = arith.constant 0 : index
    %c15_44 = arith.constant 15 : index
    %69 = vector.load %arg1[%c0_42, %c0_43, %c15_44] : memref<1x4x256xf32, #tpu.memory_space<vmem>>, vector<1x4x241xf32>
    %70 = vector.shape_cast %69 : vector<1x4x241xf32> to vector<4x241xf32>
    %71 = vector.extract_strided_slice %20 {offsets = [0, 0], sizes = [1, 241], strides = [1, 1]} : vector<1x256xi1> to vector<1x241xi1>
    %cst_45 = arith.constant 0.000000e+00 : f32
    %72 = vector.shape_cast %71 : vector<1x241xi1> to vector<1x241xi1>
    %73 = vector.broadcast %72 : vector<1x241xi1> to vector<4x241xi1>
    %74 = vector.broadcast %cst_45 : f32 to vector<4x241xf32>
    %75 = arith.select %73, %70, %74 : vector<4x241xi1>, vector<4x241xf32>
    %c24 = arith.constant 24 : index
    %c0_46 = arith.constant 0 : index
    %76 = vector.load %arg5[%c24, %c0_46] : memref<36x256xf32, #tpu.memory_space<vmem>>, vector<4x241xf32>
    tpu.vector_store %arg5[%c24, %c0_46], %75 {strides = array<i32>} : memref<36x256xf32, #tpu.memory_space<vmem>>, vector<4x241xf32>,
    %cst_47 = arith.constant 0.000000e+00 : f32
    %77 = vector.broadcast %cst_47 : f32 to vector<4x15xf32>
    %c24_48 = arith.constant 24 : index
    %c241 = arith.constant 241 : index
    %78 = vector.load %arg5[%c24_48, %c241] : memref<36x256xf32, #tpu.memory_space<vmem>>, vector<4x15xf32>
    tpu.vector_store %arg5[%c24_48, %c241], %77 {strides = array<i32>} : memref<36x256xf32, #tpu.memory_space<vmem>>, vector<4x15xf32>,
    %c0_49 = arith.constant 0 : index
    %c0_50 = arith.constant 0 : index
    %c16_51 = arith.constant 16 : index
    %79 = vector.load %arg1[%c0_49, %c0_50, %c16_51] : memref<1x4x256xf32, #tpu.memory_space<vmem>>, vector<1x4x240xf32>
    %80 = vector.shape_cast %79 : vector<1x4x240xf32> to vector<4x240xf32>
    %c28 = arith.constant 28 : index
    %c0_52 = arith.constant 0 : index
    %81 = vector.load %arg5[%c28, %c0_52] : memref<36x256xf32, #tpu.memory_space<vmem>>, vector<4x240xf32>
    tpu.vector_store %arg5[%c28, %c0_52], %80 {strides = array<i32>} : memref<36x256xf32, #tpu.memory_space<vmem>>, vector<4x240xf32>,
    %cst_53 = arith.constant 0.000000e+00 : f32
    %82 = vector.broadcast %cst_53 : f32 to vector<4x16xf32>
    %c28_54 = arith.constant 28 : index
    %c240 = arith.constant 240 : index
    %83 = vector.load %arg5[%c28_54, %c240] : memref<36x256xf32, #tpu.memory_space<vmem>>, vector<4x16xf32>
    tpu.vector_store %arg5[%c28_54, %c240], %82 {strides = array<i32>} : memref<36x256xf32, #tpu.memory_space<vmem>>, vector<4x16xf32>,
    %c0_55 = arith.constant 0 : index
    %c0_56 = arith.constant 0 : index
    %c17_57 = arith.constant 17 : index
    %84 = vector.load %arg1[%c0_55, %c0_56, %c17_57] : memref<1x4x256xf32, #tpu.memory_space<vmem>>, vector<1x4x239xf32>
    %85 = vector.shape_cast %84 : vector<1x4x239xf32> to vector<4x239xf32>
    %86 = vector.extract_strided_slice %18 {offsets = [0, 0], sizes = [1, 239], strides = [1, 1]} : vector<1x256xi1> to vector<1x239xi1>
    %cst_58 = arith.constant 0.000000e+00 : f32
    %87 = vector.shape_cast %86 : vector<1x239xi1> to vector<1x239xi1>
    %88 = vector.broadcast %87 : vector<1x239xi1> to vector<4x239xi1>
    %89 = vector.broadcast %cst_58 : f32 to vector<4x239xf32>
    %90 = arith.select %88, %85, %89 : vector<4x239xi1>, vector<4x239xf32>
    %c32 = arith.constant 32 : index
    %c0_59 = arith.constant 0 : index
    %91 = vector.load %arg5[%c32, %c0_59] : memref<36x256xf32, #tpu.memory_space<vmem>>, vector<4x239xf32>
    tpu.vector_store %arg5[%c32, %c0_59], %90 {strides = array<i32>} : memref<36x256xf32, #tpu.memory_space<vmem>>, vector<4x239xf32>,
    %cst_60 = arith.constant 0.000000e+00 : f32
    %92 = vector.broadcast %cst_60 : f32 to vector<4x17xf32>
    %c32_61 = arith.constant 32 : index
    %c239 = arith.constant 239 : index
    %93 = vector.load %arg5[%c32_61, %c239] : memref<36x256xf32, #tpu.memory_space<vmem>>, vector<4x17xf32>
    tpu.vector_store %arg5[%c32_61, %c239], %92 {strides = array<i32>} : memref<36x256xf32, #tpu.memory_space<vmem>>, vector<4x17xf32>,
    %c0_62 = arith.constant 0 : index
    %c0_63 = arith.constant 0 : index
    %94 = vector.load %arg2[%c0_62, %c0_63] : memref<8x36xf32, #tpu.memory_space<vmem>>, vector<8x36xf32>
    %c0_64 = arith.constant 0 : index
    %c0_65 = arith.constant 0 : index
    %95 = vector.load %arg5[%c0_64, %c0_65] : memref<36x256xf32, #tpu.memory_space<vmem>>, vector<36x256xf32>
    %cst_66 = arith.constant dense<0.000000e+00> : vector<8x256xf32>
    %96 = tpu.matmul %94, %95, %cst_66 {dimension_numbers = #tpu.dot_dimension_numbers<[1], [0], [0], [1], [0, 0, 1, 1], [], []>} : vector<8x36xf32>, vector<36x256xf32>, vector<8x256xf32> -> vector<8x256xf32>
    %cst_67 = arith.constant dense<0.000000e+00> : vector<8xf32>
    %97 = vector.multi_reduction <add>, %96, %cst_67 [1] : vector<8x256xf32> to vector<8xf32>
    %98 = vector.shape_cast %97 : vector<8xf32> to vector<8x1xf32>
    %c0_68 = arith.constant 0 : index
    %c0_69 = arith.constant 0 : index
    %c0_70 = arith.constant 0 : index
    %99 = vector.load %arg3[%c0_68, %c0_69, %c0_70] : memref<1x8x1xf32, #tpu.memory_space<vmem>>, vector<1x8x1xf32>
    %100 = vector.shape_cast %99 : vector<1x8x1xf32> to vector<8x1xf32>
    %101 = vector.shape_cast %98 : vector<8x1xf32> to vector<1x8x1xf32>
    tpu.vector_store %arg3[%c0_68, %c0_69, %c0_70], %101 {strides = array<i32>} : memref<1x8x1xf32, #tpu.memory_space<vmem>>, vector<1x8x1xf32>,
    %102 = arith.mulf %96, %96 : vector<8x256xf32>
    %cst_71 = arith.constant dense<0.000000e+00> : vector<8xf32>
    %103 = vector.multi_reduction <add>, %102, %cst_71 [1] : vector<8x256xf32> to vector<8xf32>
    %104 = vector.shape_cast %103 : vector<8xf32> to vector<8x1xf32>
    %c0_72 = arith.constant 0 : index
    %c0_73 = arith.constant 0 : index
    %c0_74 = arith.constant 0 : index
    %105 = vector.load %arg4[%c0_72, %c0_73, %c0_74] : memref<1x8x1xf32, #tpu.memory_space<vmem>>, vector<1x8x1xf32>
    %106 = vector.shape_cast %105 : vector<1x8x1xf32> to vector<8x1xf32>
    %107 = vector.shape_cast %104 : vector<8x1xf32> to vector<1x8x1xf32>
    tpu.vector_store %arg4[%c0_72, %c0_73, %c0_74], %107 {strides = array<i32>} : memref<1x8x1xf32, #tpu.memory_space<vmem>>, vector<1x8x1xf32>,
    return
  }
  func.func @transform_0(%arg0: i32) -> (i32, i32, i32) {
    %c0_i32 = arith.constant 0 : i32
    %c0_i32_0 = arith.constant 0 : i32
    %c0_i32_1 = arith.constant 0 : i32
    return %arg0, %c0_i32, %c0_i32_0 : i32, i32, i32
  }
  func.func @transform_1(%arg0: i32) -> (i32, i32) {
    %c0_i32 = arith.constant 0 : i32
    %c0_i32_0 = arith.constant 0 : i32
    %c0_i32_1 = arith.constant 0 : i32
    return %c0_i32, %c0_i32_0 : i32, i32
  }
  func.func @transform_2(%arg0: i32) -> (i32, i32, i32) {
    %c0_i32 = arith.constant 0 : i32
    %c0_i32_0 = arith.constant 0 : i32
    %c0_i32_1 = arith.constant 0 : i32
    return %arg0, %c0_i32, %c0_i32_0 : i32, i32, i32
  }
  func.func @transform_3(%arg0: i32) -> (i32, i32, i32) {
    %c0_i32 = arith.constant 0 : i32
    %c0_i32_0 = arith.constant 0 : i32
    %c0_i32_1 = arith.constant 0 : i32
    return %arg0, %c0_i32, %c0_i32_0 : i32, i32, i32
  }
}

module attributes {stable_mosaic.version = 11 : i64} {
  func.func @_conv_bn_pool_kernel(%arg0: i32, %arg1: memref<1x4x256xf32, #tpu.memory_space<vmem>>, %arg2: memref<8x36xf32, #tpu.memory_space<vmem>>, %arg3: memref<8x1xf32, #tpu.memory_space<vmem>>, %arg4: memref<8x1xf32, #tpu.memory_space<vmem>>, %arg5: memref<1x8x64xf32, #tpu.memory_space<vmem>>, %arg6: memref<36x256xf32, #tpu.memory_space<vmem>>) attributes {dimension_semantics = [#tpu.dimension_semantics<parallel>], iteration_bounds = array<i64: 2>, scalar_prefetch = 0 : i64, scratch_operands = 1 : i64, tpu.core_type = #tpu.core_type<tc>, window_params = [{transform_indices = @transform_0, window_bounds = array<i64: 1, 4, 256>}, {pipeline_mode = #tpu.pipeline_mode<synchronous>, transform_indices = @transform_1, window_bounds = array<i64: 8, 36>}, {pipeline_mode = #tpu.pipeline_mode<synchronous>, transform_indices = @transform_2, window_bounds = array<i64: 8, 1>}, {pipeline_mode = #tpu.pipeline_mode<synchronous>, transform_indices = @transform_3, window_bounds = array<i64: 8, 1>}, {transform_indices = @transform_4, window_bounds = array<i64: 1, 8, 64>}]} {
    %0 = tpu.iota {dimensions = array<i32: 1>} : vector<1x256xi32>
    %c16_i32 = arith.constant 16 : i32
    %c0_i32 = arith.constant 0 : i32
    %1 = arith.cmpi eq, %c16_i32, %c0_i32 : i32
    %c1_i32 = arith.constant 1 : i32
    %2 = arith.select %1, %c1_i32, %c16_i32 : i32
    %3 = vector.broadcast %2 : i32 to vector<1x256xi32>
    %4 = arith.remsi %0, %3 : vector<1x256xi32>
    %c0_i32_0 = arith.constant 0 : i32
    %5 = vector.broadcast %c0_i32_0 : i32 to vector<1x256xi32>
    %6 = arith.cmpi ne, %4, %5 : vector<1x256xi32>
    %c0_i32_1 = arith.constant 0 : i32
    %7 = vector.broadcast %c0_i32_1 : i32 to vector<1x256xi32>
    %8 = arith.cmpi slt, %4, %7 : vector<1x256xi32>
    %c0_i32_2 = arith.constant 0 : i32
    %9 = arith.cmpi slt, %2, %c0_i32_2 : i32
    %10 = vector.broadcast %9 : i1 to vector<1x256xi1>
    %11 = vector.broadcast %10 : vector<1x256xi1> to vector<1x256xi1>
    %12 = arith.xori %8, %11 : vector<1x256xi1>
    %13 = arith.andi %12, %6 : vector<1x256xi1>
    %14 = vector.broadcast %2 : i32 to vector<1x256xi32>
    %15 = arith.addi %4, %14 : vector<1x256xi32>
    %16 = arith.select %13, %15, %4 : vector<1x256xi1>, vector<1x256xi32>
    %c15_i32 = arith.constant 15 : i32
    %17 = vector.broadcast %c15_i32 : i32 to vector<1x256xi32>
    %18 = arith.cmpi slt, %16, %17 : vector<1x256xi32>
    %c0_i32_3 = arith.constant 0 : i32
    %19 = vector.broadcast %c0_i32_3 : i32 to vector<1x256xi32>
    %20 = arith.cmpi sgt, %16, %19 : vector<1x256xi32>
    %c0 = arith.constant 0 : index
    %c0_4 = arith.constant 0 : index
    %c0_5 = arith.constant 0 : index
    %21 = vector.load %arg1[%c0, %c0_4, %c0_5] : memref<1x4x256xf32, #tpu.memory_space<vmem>>, vector<1x4x239xf32>
    %22 = vector.shape_cast %21 : vector<1x4x239xf32> to vector<4x239xf32>
    %23 = vector.extract_strided_slice %20 {offsets = [0, 17], sizes = [1, 239], strides = [1, 1]} : vector<1x256xi1> to vector<1x239xi1>
    %cst = arith.constant 0.000000e+00 : f32
    %24 = vector.shape_cast %23 : vector<1x239xi1> to vector<1x239xi1>
    %25 = vector.broadcast %24 : vector<1x239xi1> to vector<4x239xi1>
    %26 = vector.broadcast %cst : f32 to vector<4x239xf32>
    %27 = arith.select %25, %22, %26 : vector<4x239xi1>, vector<4x239xf32>
    %c0_6 = arith.constant 0 : index
    %c17 = arith.constant 17 : index
    %28 = vector.load %arg6[%c0_6, %c17] : memref<36x256xf32, #tpu.memory_space<vmem>>, vector<4x239xf32>
    tpu.vector_store %arg6[%c0_6, %c17], %27 {strides = array<i32>} : memref<36x256xf32, #tpu.memory_space<vmem>>, vector<4x239xf32>,
    %cst_7 = arith.constant 0.000000e+00 : f32
    %29 = vector.broadcast %cst_7 : f32 to vector<4x17xf32>
    %c0_8 = arith.constant 0 : index
    %c0_9 = arith.constant 0 : index
    %30 = vector.load %arg6[%c0_8, %c0_9] : memref<36x256xf32, #tpu.memory_space<vmem>>, vector<4x17xf32>
    tpu.vector_store %arg6[%c0_8, %c0_9], %29 {strides = array<i32>} : memref<36x256xf32, #tpu.memory_space<vmem>>, vector<4x17xf32>,
    %c0_10 = arith.constant 0 : index
    %c0_11 = arith.constant 0 : index
    %c0_12 = arith.constant 0 : index
    %31 = vector.load %arg1[%c0_10, %c0_11, %c0_12] : memref<1x4x256xf32, #tpu.memory_space<vmem>>, vector<1x4x240xf32>
    %32 = vector.shape_cast %31 : vector<1x4x240xf32> to vector<4x240xf32>
    %c4 = arith.constant 4 : index
    %c16 = arith.constant 16 : index
    %33 = vector.load %arg6[%c4, %c16] : memref<36x256xf32, #tpu.memory_space<vmem>>, vector<4x240xf32>
    tpu.vector_store %arg6[%c4, %c16], %32 {strides = array<i32>} : memref<36x256xf32, #tpu.memory_space<vmem>>, vector<4x240xf32>,
    %cst_13 = arith.constant 0.000000e+00 : f32
    %34 = vector.broadcast %cst_13 : f32 to vector<4x16xf32>
    %c4_14 = arith.constant 4 : index
    %c0_15 = arith.constant 0 : index
    %35 = vector.load %arg6[%c4_14, %c0_15] : memref<36x256xf32, #tpu.memory_space<vmem>>, vector<4x16xf32>
    tpu.vector_store %arg6[%c4_14, %c0_15], %34 {strides = array<i32>} : memref<36x256xf32, #tpu.memory_space<vmem>>, vector<4x16xf32>,
    %c0_16 = arith.constant 0 : index
    %c0_17 = arith.constant 0 : index
    %c0_18 = arith.constant 0 : index
    %36 = vector.load %arg1[%c0_16, %c0_17, %c0_18] : memref<1x4x256xf32, #tpu.memory_space<vmem>>, vector<1x4x241xf32>
    %37 = vector.shape_cast %36 : vector<1x4x241xf32> to vector<4x241xf32>
    %38 = vector.extract_strided_slice %18 {offsets = [0, 15], sizes = [1, 241], strides = [1, 1]} : vector<1x256xi1> to vector<1x241xi1>
    %cst_19 = arith.constant 0.000000e+00 : f32
    %39 = vector.shape_cast %38 : vector<1x241xi1> to vector<1x241xi1>
    %40 = vector.broadcast %39 : vector<1x241xi1> to vector<4x241xi1>
    %41 = vector.broadcast %cst_19 : f32 to vector<4x241xf32>
    %42 = arith.select %40, %37, %41 : vector<4x241xi1>, vector<4x241xf32>
    %c8 = arith.constant 8 : index
    %c15 = arith.constant 15 : index
    %43 = vector.load %arg6[%c8, %c15] : memref<36x256xf32, #tpu.memory_space<vmem>>, vector<4x241xf32>
    tpu.vector_store %arg6[%c8, %c15], %42 {strides = array<i32>} : memref<36x256xf32, #tpu.memory_space<vmem>>, vector<4x241xf32>,
    %cst_20 = arith.constant 0.000000e+00 : f32
    %44 = vector.broadcast %cst_20 : f32 to vector<4x15xf32>
    %c8_21 = arith.constant 8 : index
    %c0_22 = arith.constant 0 : index
    %45 = vector.load %arg6[%c8_21, %c0_22] : memref<36x256xf32, #tpu.memory_space<vmem>>, vector<4x15xf32>
    tpu.vector_store %arg6[%c8_21, %c0_22], %44 {strides = array<i32>} : memref<36x256xf32, #tpu.memory_space<vmem>>, vector<4x15xf32>,
    %c0_23 = arith.constant 0 : index
    %c0_24 = arith.constant 0 : index
    %c0_25 = arith.constant 0 : index
    %46 = vector.load %arg1[%c0_23, %c0_24, %c0_25] : memref<1x4x256xf32, #tpu.memory_space<vmem>>, vector<1x4x255xf32>
    %47 = vector.shape_cast %46 : vector<1x4x255xf32> to vector<4x255xf32>
    %48 = vector.extract_strided_slice %20 {offsets = [0, 1], sizes = [1, 255], strides = [1, 1]} : vector<1x256xi1> to vector<1x255xi1>
    %cst_26 = arith.constant 0.000000e+00 : f32
    %49 = vector.shape_cast %48 : vector<1x255xi1> to vector<1x255xi1>
    %50 = vector.broadcast %49 : vector<1x255xi1> to vector<4x255xi1>
    %51 = vector.broadcast %cst_26 : f32 to vector<4x255xf32>
    %52 = arith.select %50, %47, %51 : vector<4x255xi1>, vector<4x255xf32>
    %c12 = arith.constant 12 : index
    %c1 = arith.constant 1 : index
    %53 = vector.load %arg6[%c12, %c1] : memref<36x256xf32, #tpu.memory_space<vmem>>, vector<4x255xf32>
    tpu.vector_store %arg6[%c12, %c1], %52 {strides = array<i32>} : memref<36x256xf32, #tpu.memory_space<vmem>>, vector<4x255xf32>,
    %cst_27 = arith.constant 0.000000e+00 : f32
    %54 = vector.broadcast %cst_27 : f32 to vector<4x1xf32>
    %c12_28 = arith.constant 12 : index
    %c0_29 = arith.constant 0 : index
    %55 = vector.load %arg6[%c12_28, %c0_29] : memref<36x256xf32, #tpu.memory_space<vmem>>, vector<4x1xf32>
    tpu.vector_store %arg6[%c12_28, %c0_29], %54 {strides = array<i32>} : memref<36x256xf32, #tpu.memory_space<vmem>>, vector<4x1xf32>,
    %c0_30 = arith.constant 0 : index
    %c0_31 = arith.constant 0 : index
    %c0_32 = arith.constant 0 : index
    %56 = vector.load %arg1[%c0_30, %c0_31, %c0_32] : memref<1x4x256xf32, #tpu.memory_space<vmem>>, vector<1x4x256xf32>
    %57 = vector.shape_cast %56 : vector<1x4x256xf32> to vector<4x256xf32>
    %c16_33 = arith.constant 16 : index
    %c0_34 = arith.constant 0 : index
    %58 = vector.load %arg6[%c16_33, %c0_34] : memref<36x256xf32, #tpu.memory_space<vmem>>, vector<4x256xf32>
    tpu.vector_store %arg6[%c16_33, %c0_34], %57 {strides = array<i32>} : memref<36x256xf32, #tpu.memory_space<vmem>>, vector<4x256xf32>,
    %c0_35 = arith.constant 0 : index
    %c0_36 = arith.constant 0 : index
    %c1_37 = arith.constant 1 : index
    %59 = vector.load %arg1[%c0_35, %c0_36, %c1_37] : memref<1x4x256xf32, #tpu.memory_space<vmem>>, vector<1x4x255xf32>
    %60 = vector.shape_cast %59 : vector<1x4x255xf32> to vector<4x255xf32>
    %61 = vector.extract_strided_slice %18 {offsets = [0, 0], sizes = [1, 255], strides = [1, 1]} : vector<1x256xi1> to vector<1x255xi1>
    %cst_38 = arith.constant 0.000000e+00 : f32
    %62 = vector.shape_cast %61 : vector<1x255xi1> to vector<1x255xi1>
    %63 = vector.broadcast %62 : vector<1x255xi1> to vector<4x255xi1>
    %64 = vector.broadcast %cst_38 : f32 to vector<4x255xf32>
    %65 = arith.select %63, %60, %64 : vector<4x255xi1>, vector<4x255xf32>
    %c20 = arith.constant 20 : index
    %c0_39 = arith.constant 0 : index
    %66 = vector.load %arg6[%c20, %c0_39] : memref<36x256xf32, #tpu.memory_space<vmem>>, vector<4x255xf32>
    tpu.vector_store %arg6[%c20, %c0_39], %65 {strides = array<i32>} : memref<36x256xf32, #tpu.memory_space<vmem>>, vector<4x255xf32>,
    %cst_40 = arith.constant 0.000000e+00 : f32
    %67 = vector.broadcast %cst_40 : f32 to vector<4x1xf32>
    %c20_41 = arith.constant 20 : index
    %c255 = arith.constant 255 : index
    %68 = vector.load %arg6[%c20_41, %c255] : memref<36x256xf32, #tpu.memory_space<vmem>>, vector<4x1xf32>
    tpu.vector_store %arg6[%c20_41, %c255], %67 {strides = array<i32>} : memref<36x256xf32, #tpu.memory_space<vmem>>, vector<4x1xf32>,
    %c0_42 = arith.constant 0 : index
    %c0_43 = arith.constant 0 : index
    %c15_44 = arith.constant 15 : index
    %69 = vector.load %arg1[%c0_42, %c0_43, %c15_44] : memref<1x4x256xf32, #tpu.memory_space<vmem>>, vector<1x4x241xf32>
    %70 = vector.shape_cast %69 : vector<1x4x241xf32> to vector<4x241xf32>
    %71 = vector.extract_strided_slice %20 {offsets = [0, 0], sizes = [1, 241], strides = [1, 1]} : vector<1x256xi1> to vector<1x241xi1>
    %cst_45 = arith.constant 0.000000e+00 : f32
    %72 = vector.shape_cast %71 : vector<1x241xi1> to vector<1x241xi1>
    %73 = vector.broadcast %72 : vector<1x241xi1> to vector<4x241xi1>
    %74 = vector.broadcast %cst_45 : f32 to vector<4x241xf32>
    %75 = arith.select %73, %70, %74 : vector<4x241xi1>, vector<4x241xf32>
    %c24 = arith.constant 24 : index
    %c0_46 = arith.constant 0 : index
    %76 = vector.load %arg6[%c24, %c0_46] : memref<36x256xf32, #tpu.memory_space<vmem>>, vector<4x241xf32>
    tpu.vector_store %arg6[%c24, %c0_46], %75 {strides = array<i32>} : memref<36x256xf32, #tpu.memory_space<vmem>>, vector<4x241xf32>,
    %cst_47 = arith.constant 0.000000e+00 : f32
    %77 = vector.broadcast %cst_47 : f32 to vector<4x15xf32>
    %c24_48 = arith.constant 24 : index
    %c241 = arith.constant 241 : index
    %78 = vector.load %arg6[%c24_48, %c241] : memref<36x256xf32, #tpu.memory_space<vmem>>, vector<4x15xf32>
    tpu.vector_store %arg6[%c24_48, %c241], %77 {strides = array<i32>} : memref<36x256xf32, #tpu.memory_space<vmem>>, vector<4x15xf32>,
    %c0_49 = arith.constant 0 : index
    %c0_50 = arith.constant 0 : index
    %c16_51 = arith.constant 16 : index
    %79 = vector.load %arg1[%c0_49, %c0_50, %c16_51] : memref<1x4x256xf32, #tpu.memory_space<vmem>>, vector<1x4x240xf32>
    %80 = vector.shape_cast %79 : vector<1x4x240xf32> to vector<4x240xf32>
    %c28 = arith.constant 28 : index
    %c0_52 = arith.constant 0 : index
    %81 = vector.load %arg6[%c28, %c0_52] : memref<36x256xf32, #tpu.memory_space<vmem>>, vector<4x240xf32>
    tpu.vector_store %arg6[%c28, %c0_52], %80 {strides = array<i32>} : memref<36x256xf32, #tpu.memory_space<vmem>>, vector<4x240xf32>,
    %cst_53 = arith.constant 0.000000e+00 : f32
    %82 = vector.broadcast %cst_53 : f32 to vector<4x16xf32>
    %c28_54 = arith.constant 28 : index
    %c240 = arith.constant 240 : index
    %83 = vector.load %arg6[%c28_54, %c240] : memref<36x256xf32, #tpu.memory_space<vmem>>, vector<4x16xf32>
    tpu.vector_store %arg6[%c28_54, %c240], %82 {strides = array<i32>} : memref<36x256xf32, #tpu.memory_space<vmem>>, vector<4x16xf32>,
    %c0_55 = arith.constant 0 : index
    %c0_56 = arith.constant 0 : index
    %c17_57 = arith.constant 17 : index
    %84 = vector.load %arg1[%c0_55, %c0_56, %c17_57] : memref<1x4x256xf32, #tpu.memory_space<vmem>>, vector<1x4x239xf32>
    %85 = vector.shape_cast %84 : vector<1x4x239xf32> to vector<4x239xf32>
    %86 = vector.extract_strided_slice %18 {offsets = [0, 0], sizes = [1, 239], strides = [1, 1]} : vector<1x256xi1> to vector<1x239xi1>
    %cst_58 = arith.constant 0.000000e+00 : f32
    %87 = vector.shape_cast %86 : vector<1x239xi1> to vector<1x239xi1>
    %88 = vector.broadcast %87 : vector<1x239xi1> to vector<4x239xi1>
    %89 = vector.broadcast %cst_58 : f32 to vector<4x239xf32>
    %90 = arith.select %88, %85, %89 : vector<4x239xi1>, vector<4x239xf32>
    %c32 = arith.constant 32 : index
    %c0_59 = arith.constant 0 : index
    %91 = vector.load %arg6[%c32, %c0_59] : memref<36x256xf32, #tpu.memory_space<vmem>>, vector<4x239xf32>
    tpu.vector_store %arg6[%c32, %c0_59], %90 {strides = array<i32>} : memref<36x256xf32, #tpu.memory_space<vmem>>, vector<4x239xf32>,
    %cst_60 = arith.constant 0.000000e+00 : f32
    %92 = vector.broadcast %cst_60 : f32 to vector<4x17xf32>
    %c32_61 = arith.constant 32 : index
    %c239 = arith.constant 239 : index
    %93 = vector.load %arg6[%c32_61, %c239] : memref<36x256xf32, #tpu.memory_space<vmem>>, vector<4x17xf32>
    tpu.vector_store %arg6[%c32_61, %c239], %92 {strides = array<i32>} : memref<36x256xf32, #tpu.memory_space<vmem>>, vector<4x17xf32>,
    %c0_62 = arith.constant 0 : index
    %c0_63 = arith.constant 0 : index
    %94 = vector.load %arg2[%c0_62, %c0_63] : memref<8x36xf32, #tpu.memory_space<vmem>>, vector<8x36xf32>
    %c0_64 = arith.constant 0 : index
    %c0_65 = arith.constant 0 : index
    %95 = vector.load %arg6[%c0_64, %c0_65] : memref<36x256xf32, #tpu.memory_space<vmem>>, vector<36x256xf32>
    %cst_66 = arith.constant dense<0.000000e+00> : vector<8x256xf32>
    %96 = tpu.matmul %94, %95, %cst_66 {dimension_numbers = #tpu.dot_dimension_numbers<[1], [0], [0], [1], [0, 0, 1, 1], [], []>} : vector<8x36xf32>, vector<36x256xf32>, vector<8x256xf32> -> vector<8x256xf32>
    %c0_67 = arith.constant 0 : index
    %c0_68 = arith.constant 0 : index
    %97 = vector.load %arg3[%c0_67, %c0_68] : memref<8x1xf32, #tpu.memory_space<vmem>>, vector<8x1xf32>
    %98 = vector.broadcast %97 : vector<8x1xf32> to vector<8x256xf32>
    %99 = arith.mulf %96, %98 : vector<8x256xf32>
    %c0_69 = arith.constant 0 : index
    %c0_70 = arith.constant 0 : index
    %100 = vector.load %arg4[%c0_69, %c0_70] : memref<8x1xf32, #tpu.memory_space<vmem>>, vector<8x1xf32>
    %101 = vector.broadcast %100 : vector<8x1xf32> to vector<8x256xf32>
    %102 = arith.addf %99, %101 : vector<8x256xf32>
    %cst_71 = arith.constant 0.000000e+00 : f32
    %103 = vector.broadcast %cst_71 : f32 to vector<8x256xf32>
    %104 = arith.cmpf ogt, %102, %103 : vector<8x256xf32>
    %cst_72 = arith.constant 2.000000e-01 : f32
    %105 = vector.broadcast %cst_72 : f32 to vector<8x256xf32>
    %106 = arith.mulf %105, %102 : vector<8x256xf32>
    %107 = arith.select %104, %102, %106 : vector<8x256xi1>, vector<8x256xf32>
    %108 = tpu.iota {dimensions = array<i32: 0>} : vector<16x8xi32>
    %109 = tpu.iota {dimensions = array<i32: 1>} : vector<16x8xi32>
    %c2_i32 = arith.constant 2 : i32
    %110 = vector.broadcast %c2_i32 : i32 to vector<16x8xi32>
    %111 = arith.muli %110, %109 : vector<16x8xi32>
    %112 = arith.cmpi eq, %108, %111 : vector<16x8xi32>
    %113 = arith.extui %112 : vector<16x8xi1> to vector<16x8xi32>
    %114 = arith.sitofp %113 : vector<16x8xi32> to vector<16x8xf32>
    %c2_i32_73 = arith.constant 2 : i32
    %115 = vector.broadcast %c2_i32_73 : i32 to vector<16x8xi32>
    %116 = arith.muli %115, %109 : vector<16x8xi32>
    %c1_i32_74 = arith.constant 1 : i32
    %117 = vector.broadcast %c1_i32_74 : i32 to vector<16x8xi32>
    %118 = arith.addi %116, %117 : vector<16x8xi32>
    %119 = arith.cmpi eq, %108, %118 : vector<16x8xi32>
    %120 = arith.extui %119 : vector<16x8xi1> to vector<16x8xi32>
    %121 = arith.sitofp %120 : vector<16x8xi32> to vector<16x8xf32>
    %122 = vector.extract_strided_slice %107 {offsets = [0, 0], sizes = [8, 32], strides = [1, 1]} : vector<8x256xf32> to vector<8x32xf32>
    %123 = vector.extract_strided_slice %122 {offsets = [0, 0], sizes = [8, 16], strides = [1, 1]} : vector<8x32xf32> to vector<8x16xf32>
    %124 = vector.extract_strided_slice %122 {offsets = [0, 16], sizes = [8, 16], strides = [1, 1]} : vector<8x32xf32> to vector<8x16xf32>
    %125 = arith.maximumf %123, %124 : vector<8x16xf32>
    %cst_75 = arith.constant dense<0.000000e+00> : vector<8x8xf32>
    %126 = tpu.matmul %125, %114, %cst_75 {dimension_numbers = #tpu.dot_dimension_numbers<[1], [0], [0], [1], [0, 0, 1, 1], [], []>} : vector<8x16xf32>, vector<16x8xf32>, vector<8x8xf32> -> vector<8x8xf32>
    %cst_76 = arith.constant dense<0.000000e+00> : vector<8x8xf32>
    %127 = tpu.matmul %125, %121, %cst_76 {dimension_numbers = #tpu.dot_dimension_numbers<[1], [0], [0], [1], [0, 0, 1, 1], [], []>} : vector<8x16xf32>, vector<16x8xf32>, vector<8x8xf32> -> vector<8x8xf32>
    %128 = arith.maximumf %126, %127 : vector<8x8xf32>
    %c0_77 = arith.constant 0 : index
    %c0_78 = arith.constant 0 : index
    %c0_79 = arith.constant 0 : index
    %129 = vector.load %arg5[%c0_77, %c0_78, %c0_79] : memref<1x8x64xf32, #tpu.memory_space<vmem>>, vector<1x8x8xf32>
    %130 = vector.shape_cast %129 : vector<1x8x8xf32> to vector<8x8xf32>
    %131 = vector.shape_cast %128 : vector<8x8xf32> to vector<1x8x8xf32>
    tpu.vector_store %arg5[%c0_77, %c0_78, %c0_79], %131 {strides = array<i32>} : memref<1x8x64xf32, #tpu.memory_space<vmem>>, vector<1x8x8xf32>,
    %132 = vector.extract_strided_slice %107 {offsets = [0, 32], sizes = [8, 32], strides = [1, 1]} : vector<8x256xf32> to vector<8x32xf32>
    %133 = vector.extract_strided_slice %132 {offsets = [0, 0], sizes = [8, 16], strides = [1, 1]} : vector<8x32xf32> to vector<8x16xf32>
    %134 = vector.extract_strided_slice %132 {offsets = [0, 16], sizes = [8, 16], strides = [1, 1]} : vector<8x32xf32> to vector<8x16xf32>
    %135 = arith.maximumf %133, %134 : vector<8x16xf32>
    %cst_80 = arith.constant dense<0.000000e+00> : vector<8x8xf32>
    %136 = tpu.matmul %135, %114, %cst_80 {dimension_numbers = #tpu.dot_dimension_numbers<[1], [0], [0], [1], [0, 0, 1, 1], [], []>} : vector<8x16xf32>, vector<16x8xf32>, vector<8x8xf32> -> vector<8x8xf32>
    %cst_81 = arith.constant dense<0.000000e+00> : vector<8x8xf32>
    %137 = tpu.matmul %135, %121, %cst_81 {dimension_numbers = #tpu.dot_dimension_numbers<[1], [0], [0], [1], [0, 0, 1, 1], [], []>} : vector<8x16xf32>, vector<16x8xf32>, vector<8x8xf32> -> vector<8x8xf32>
    %138 = arith.maximumf %136, %137 : vector<8x8xf32>
    %c0_82 = arith.constant 0 : index
    %c0_83 = arith.constant 0 : index
    %c8_84 = arith.constant 8 : index
    %139 = vector.load %arg5[%c0_82, %c0_83, %c8_84] : memref<1x8x64xf32, #tpu.memory_space<vmem>>, vector<1x8x8xf32>
    %140 = vector.shape_cast %139 : vector<1x8x8xf32> to vector<8x8xf32>
    %141 = vector.shape_cast %138 : vector<8x8xf32> to vector<1x8x8xf32>
    tpu.vector_store %arg5[%c0_82, %c0_83, %c8_84], %141 {strides = array<i32>} : memref<1x8x64xf32, #tpu.memory_space<vmem>>, vector<1x8x8xf32>,
    %142 = vector.extract_strided_slice %107 {offsets = [0, 64], sizes = [8, 32], strides = [1, 1]} : vector<8x256xf32> to vector<8x32xf32>
    %143 = vector.extract_strided_slice %142 {offsets = [0, 0], sizes = [8, 16], strides = [1, 1]} : vector<8x32xf32> to vector<8x16xf32>
    %144 = vector.extract_strided_slice %142 {offsets = [0, 16], sizes = [8, 16], strides = [1, 1]} : vector<8x32xf32> to vector<8x16xf32>
    %145 = arith.maximumf %143, %144 : vector<8x16xf32>
    %cst_85 = arith.constant dense<0.000000e+00> : vector<8x8xf32>
    %146 = tpu.matmul %145, %114, %cst_85 {dimension_numbers = #tpu.dot_dimension_numbers<[1], [0], [0], [1], [0, 0, 1, 1], [], []>} : vector<8x16xf32>, vector<16x8xf32>, vector<8x8xf32> -> vector<8x8xf32>
    %cst_86 = arith.constant dense<0.000000e+00> : vector<8x8xf32>
    %147 = tpu.matmul %145, %121, %cst_86 {dimension_numbers = #tpu.dot_dimension_numbers<[1], [0], [0], [1], [0, 0, 1, 1], [], []>} : vector<8x16xf32>, vector<16x8xf32>, vector<8x8xf32> -> vector<8x8xf32>
    %148 = arith.maximumf %146, %147 : vector<8x8xf32>
    %c0_87 = arith.constant 0 : index
    %c0_88 = arith.constant 0 : index
    %c16_89 = arith.constant 16 : index
    %149 = vector.load %arg5[%c0_87, %c0_88, %c16_89] : memref<1x8x64xf32, #tpu.memory_space<vmem>>, vector<1x8x8xf32>
    %150 = vector.shape_cast %149 : vector<1x8x8xf32> to vector<8x8xf32>
    %151 = vector.shape_cast %148 : vector<8x8xf32> to vector<1x8x8xf32>
    tpu.vector_store %arg5[%c0_87, %c0_88, %c16_89], %151 {strides = array<i32>} : memref<1x8x64xf32, #tpu.memory_space<vmem>>, vector<1x8x8xf32>,
    %152 = vector.extract_strided_slice %107 {offsets = [0, 96], sizes = [8, 32], strides = [1, 1]} : vector<8x256xf32> to vector<8x32xf32>
    %153 = vector.extract_strided_slice %152 {offsets = [0, 0], sizes = [8, 16], strides = [1, 1]} : vector<8x32xf32> to vector<8x16xf32>
    %154 = vector.extract_strided_slice %152 {offsets = [0, 16], sizes = [8, 16], strides = [1, 1]} : vector<8x32xf32> to vector<8x16xf32>
    %155 = arith.maximumf %153, %154 : vector<8x16xf32>
    %cst_90 = arith.constant dense<0.000000e+00> : vector<8x8xf32>
    %156 = tpu.matmul %155, %114, %cst_90 {dimension_numbers = #tpu.dot_dimension_numbers<[1], [0], [0], [1], [0, 0, 1, 1], [], []>} : vector<8x16xf32>, vector<16x8xf32>, vector<8x8xf32> -> vector<8x8xf32>
    %cst_91 = arith.constant dense<0.000000e+00> : vector<8x8xf32>
    %157 = tpu.matmul %155, %121, %cst_91 {dimension_numbers = #tpu.dot_dimension_numbers<[1], [0], [0], [1], [0, 0, 1, 1], [], []>} : vector<8x16xf32>, vector<16x8xf32>, vector<8x8xf32> -> vector<8x8xf32>
    %158 = arith.maximumf %156, %157 : vector<8x8xf32>
    %c0_92 = arith.constant 0 : index
    %c0_93 = arith.constant 0 : index
    %c24_94 = arith.constant 24 : index
    %159 = vector.load %arg5[%c0_92, %c0_93, %c24_94] : memref<1x8x64xf32, #tpu.memory_space<vmem>>, vector<1x8x8xf32>
    %160 = vector.shape_cast %159 : vector<1x8x8xf32> to vector<8x8xf32>
    %161 = vector.shape_cast %158 : vector<8x8xf32> to vector<1x8x8xf32>
    tpu.vector_store %arg5[%c0_92, %c0_93, %c24_94], %161 {strides = array<i32>} : memref<1x8x64xf32, #tpu.memory_space<vmem>>, vector<1x8x8xf32>,
    %162 = vector.extract_strided_slice %107 {offsets = [0, 128], sizes = [8, 32], strides = [1, 1]} : vector<8x256xf32> to vector<8x32xf32>
    %163 = vector.extract_strided_slice %162 {offsets = [0, 0], sizes = [8, 16], strides = [1, 1]} : vector<8x32xf32> to vector<8x16xf32>
    %164 = vector.extract_strided_slice %162 {offsets = [0, 16], sizes = [8, 16], strides = [1, 1]} : vector<8x32xf32> to vector<8x16xf32>
    %165 = arith.maximumf %163, %164 : vector<8x16xf32>
    %cst_95 = arith.constant dense<0.000000e+00> : vector<8x8xf32>
    %166 = tpu.matmul %165, %114, %cst_95 {dimension_numbers = #tpu.dot_dimension_numbers<[1], [0], [0], [1], [0, 0, 1, 1], [], []>} : vector<8x16xf32>, vector<16x8xf32>, vector<8x8xf32> -> vector<8x8xf32>
    %cst_96 = arith.constant dense<0.000000e+00> : vector<8x8xf32>
    %167 = tpu.matmul %165, %121, %cst_96 {dimension_numbers = #tpu.dot_dimension_numbers<[1], [0], [0], [1], [0, 0, 1, 1], [], []>} : vector<8x16xf32>, vector<16x8xf32>, vector<8x8xf32> -> vector<8x8xf32>
    %168 = arith.maximumf %166, %167 : vector<8x8xf32>
    %c0_97 = arith.constant 0 : index
    %c0_98 = arith.constant 0 : index
    %c32_99 = arith.constant 32 : index
    %169 = vector.load %arg5[%c0_97, %c0_98, %c32_99] : memref<1x8x64xf32, #tpu.memory_space<vmem>>, vector<1x8x8xf32>
    %170 = vector.shape_cast %169 : vector<1x8x8xf32> to vector<8x8xf32>
    %171 = vector.shape_cast %168 : vector<8x8xf32> to vector<1x8x8xf32>
    tpu.vector_store %arg5[%c0_97, %c0_98, %c32_99], %171 {strides = array<i32>} : memref<1x8x64xf32, #tpu.memory_space<vmem>>, vector<1x8x8xf32>,
    %172 = vector.extract_strided_slice %107 {offsets = [0, 160], sizes = [8, 32], strides = [1, 1]} : vector<8x256xf32> to vector<8x32xf32>
    %173 = vector.extract_strided_slice %172 {offsets = [0, 0], sizes = [8, 16], strides = [1, 1]} : vector<8x32xf32> to vector<8x16xf32>
    %174 = vector.extract_strided_slice %172 {offsets = [0, 16], sizes = [8, 16], strides = [1, 1]} : vector<8x32xf32> to vector<8x16xf32>
    %175 = arith.maximumf %173, %174 : vector<8x16xf32>
    %cst_100 = arith.constant dense<0.000000e+00> : vector<8x8xf32>
    %176 = tpu.matmul %175, %114, %cst_100 {dimension_numbers = #tpu.dot_dimension_numbers<[1], [0], [0], [1], [0, 0, 1, 1], [], []>} : vector<8x16xf32>, vector<16x8xf32>, vector<8x8xf32> -> vector<8x8xf32>
    %cst_101 = arith.constant dense<0.000000e+00> : vector<8x8xf32>
    %177 = tpu.matmul %175, %121, %cst_101 {dimension_numbers = #tpu.dot_dimension_numbers<[1], [0], [0], [1], [0, 0, 1, 1], [], []>} : vector<8x16xf32>, vector<16x8xf32>, vector<8x8xf32> -> vector<8x8xf32>
    %178 = arith.maximumf %176, %177 : vector<8x8xf32>
    %c0_102 = arith.constant 0 : index
    %c0_103 = arith.constant 0 : index
    %c40 = arith.constant 40 : index
    %179 = vector.load %arg5[%c0_102, %c0_103, %c40] : memref<1x8x64xf32, #tpu.memory_space<vmem>>, vector<1x8x8xf32>
    %180 = vector.shape_cast %179 : vector<1x8x8xf32> to vector<8x8xf32>
    %181 = vector.shape_cast %178 : vector<8x8xf32> to vector<1x8x8xf32>
    tpu.vector_store %arg5[%c0_102, %c0_103, %c40], %181 {strides = array<i32>} : memref<1x8x64xf32, #tpu.memory_space<vmem>>, vector<1x8x8xf32>,
    %182 = vector.extract_strided_slice %107 {offsets = [0, 192], sizes = [8, 32], strides = [1, 1]} : vector<8x256xf32> to vector<8x32xf32>
    %183 = vector.extract_strided_slice %182 {offsets = [0, 0], sizes = [8, 16], strides = [1, 1]} : vector<8x32xf32> to vector<8x16xf32>
    %184 = vector.extract_strided_slice %182 {offsets = [0, 16], sizes = [8, 16], strides = [1, 1]} : vector<8x32xf32> to vector<8x16xf32>
    %185 = arith.maximumf %183, %184 : vector<8x16xf32>
    %cst_104 = arith.constant dense<0.000000e+00> : vector<8x8xf32>
    %186 = tpu.matmul %185, %114, %cst_104 {dimension_numbers = #tpu.dot_dimension_numbers<[1], [0], [0], [1], [0, 0, 1, 1], [], []>} : vector<8x16xf32>, vector<16x8xf32>, vector<8x8xf32> -> vector<8x8xf32>
    %cst_105 = arith.constant dense<0.000000e+00> : vector<8x8xf32>
    %187 = tpu.matmul %185, %121, %cst_105 {dimension_numbers = #tpu.dot_dimension_numbers<[1], [0], [0], [1], [0, 0, 1, 1], [], []>} : vector<8x16xf32>, vector<16x8xf32>, vector<8x8xf32> -> vector<8x8xf32>
    %188 = arith.maximumf %186, %187 : vector<8x8xf32>
    %c0_106 = arith.constant 0 : index
    %c0_107 = arith.constant 0 : index
    %c48 = arith.constant 48 : index
    %189 = vector.load %arg5[%c0_106, %c0_107, %c48] : memref<1x8x64xf32, #tpu.memory_space<vmem>>, vector<1x8x8xf32>
    %190 = vector.shape_cast %189 : vector<1x8x8xf32> to vector<8x8xf32>
    %191 = vector.shape_cast %188 : vector<8x8xf32> to vector<1x8x8xf32>
    tpu.vector_store %arg5[%c0_106, %c0_107, %c48], %191 {strides = array<i32>} : memref<1x8x64xf32, #tpu.memory_space<vmem>>, vector<1x8x8xf32>,
    %192 = vector.extract_strided_slice %107 {offsets = [0, 224], sizes = [8, 32], strides = [1, 1]} : vector<8x256xf32> to vector<8x32xf32>
    %193 = vector.extract_strided_slice %192 {offsets = [0, 0], sizes = [8, 16], strides = [1, 1]} : vector<8x32xf32> to vector<8x16xf32>
    %194 = vector.extract_strided_slice %192 {offsets = [0, 16], sizes = [8, 16], strides = [1, 1]} : vector<8x32xf32> to vector<8x16xf32>
    %195 = arith.maximumf %193, %194 : vector<8x16xf32>
    %cst_108 = arith.constant dense<0.000000e+00> : vector<8x8xf32>
    %196 = tpu.matmul %195, %114, %cst_108 {dimension_numbers = #tpu.dot_dimension_numbers<[1], [0], [0], [1], [0, 0, 1, 1], [], []>} : vector<8x16xf32>, vector<16x8xf32>, vector<8x8xf32> -> vector<8x8xf32>
    %cst_109 = arith.constant dense<0.000000e+00> : vector<8x8xf32>
    %197 = tpu.matmul %195, %121, %cst_109 {dimension_numbers = #tpu.dot_dimension_numbers<[1], [0], [0], [1], [0, 0, 1, 1], [], []>} : vector<8x16xf32>, vector<16x8xf32>, vector<8x8xf32> -> vector<8x8xf32>
    %198 = arith.maximumf %196, %197 : vector<8x8xf32>
    %c0_110 = arith.constant 0 : index
    %c0_111 = arith.constant 0 : index
    %c56 = arith.constant 56 : index
    %199 = vector.load %arg5[%c0_110, %c0_111, %c56] : memref<1x8x64xf32, #tpu.memory_space<vmem>>, vector<1x8x8xf32>
    %200 = vector.shape_cast %199 : vector<1x8x8xf32> to vector<8x8xf32>
    %201 = vector.shape_cast %198 : vector<8x8xf32> to vector<1x8x8xf32>
    tpu.vector_store %arg5[%c0_110, %c0_111, %c56], %201 {strides = array<i32>} : memref<1x8x64xf32, #tpu.memory_space<vmem>>, vector<1x8x8xf32>,
    return
  }
  func.func @transform_0(%arg0: i32) -> (i32, i32, i32) {
    %c0_i32 = arith.constant 0 : i32
    %c0_i32_0 = arith.constant 0 : i32
    %c0_i32_1 = arith.constant 0 : i32
    return %arg0, %c0_i32, %c0_i32_0 : i32, i32, i32
  }
  func.func @transform_1(%arg0: i32) -> (i32, i32) {
    %c0_i32 = arith.constant 0 : i32
    %c0_i32_0 = arith.constant 0 : i32
    %c0_i32_1 = arith.constant 0 : i32
    return %c0_i32, %c0_i32_0 : i32, i32
  }
  func.func @transform_2(%arg0: i32) -> (i32, i32) {
    %c0_i32 = arith.constant 0 : i32
    %c0_i32_0 = arith.constant 0 : i32
    %c0_i32_1 = arith.constant 0 : i32
    return %c0_i32, %c0_i32_0 : i32, i32
  }
  func.func @transform_3(%arg0: i32) -> (i32, i32) {
    %c0_i32 = arith.constant 0 : i32
    %c0_i32_0 = arith.constant 0 : i32
    %c0_i32_1 = arith.constant 0 : i32
    return %c0_i32, %c0_i32_0 : i32, i32
  }
  func.func @transform_4(%arg0: i32) -> (i32, i32, i32) {
    %c0_i32 = arith.constant 0 : i32
    %c0_i32_0 = arith.constant 0 : i32
    %c0_i32_1 = arith.constant 0 : i32
    return %arg0, %c0_i32, %c0_i32_0 : i32, i32, i32
  }
}

</mosaic_0001>

<bundles_post_ra>
// kernel: encoder_block.2
= control target key start
LH: loop header
LB: loop body
LE: loop exit
PB: predicated region body
PF: predicated region fallthrough
CT: control target
= control target key end

     0   :  { %s643_s12 = smov 0   ;;  %s724_s0 = inlined_call_operand.vmem [shape: f32[2,4,256], index: 0, kind: input, shape index: {}]   ;;  %s725_s1 = inlined_call_operand.vmem [shape: f32[8,36], index: 1, kind: input, shape index: {}]   ;;  %s726_s2 = inlined_call_operand.vmem [shape: f32[2,8,1], index: 2, kind: output, shape index: {0}]   ;;  %s727_s3 = inlined_call_operand.vmem [shape: f32[2,8,1], index: 3, kind: output, shape index: {1}]  }
   0x1 LB: > { %s564_s13 = sadd.s32 4294967295, %s612_s12   ;;  %p568_p0 = scmp.ge.s32.totalorder %s612_s12, 1  ;;  %s612_s12 = sphi %s643_s12, %s14_s12  }
   0x2   : > { %p140_p1 = scmp.lt.s32.totalorder %s612_s12, 3 }
   0x4   : > { %p141_p2 = pnand %p568_p0, %p140_p1 }
   0x5   : > { %p167_p3 = scmp.lt.s32.totalorder (!%p141_p2), %s564_s13, 1  ;;  %v614_v0 = vmov (!%p141_p2), 0.0   ;;  %s615_s18 = smov (!%p141_p2), 1   ;;  %v180_v4 = vlaneseq (!%p141_p2)  ;;  %vm228_vm1 = vcmask (!%p141_p2), 1043592   ;;  %vm231_vm2 = vcmask (!%p141_p2), 134144  }
   0x6   : > { %144 = sbr.rel (%p141_p2) target bundleno = 533 (0x215), region = 28  ;;  %463 = vmatprep.mubr.f32.mxu0 (!%p141_p2), %v614_v0  ;;  %s616_s19 = smov (!%p141_p2), 17   ;;  %vm290_vm3 = vcmask (!%p141_p2), 1047564   ;;  %vm293_vm4 = vcmask (!%p141_p2), 7172   ;;  %vm222_vm6 = vcmask (!%p141_p2), 138240   ;;  %vm266_vm7 = vcmask (!%p141_p2), 1043576  }
   0x7   : > { %s617_s20 = smov (!%p141_p2), 15   ;;  %s618_s21 = smov (!%p141_p2), 16   ;;  %v181_v5 = vand.u32 (!%p141_p2), 127, %v180_v4  ;;  %vm269_vm9 = vcmask (!%p141_p2), 117760   ;;  %vm278_vm10 = vcmask (!%p141_p2), 7168   ;;  %vm260_vm11 = vcmask (!%p141_p2), 121856  }
   0x8   : > { %s619_s22 = smov (!%p141_p2), 127   ;;  %s620_s23 = smov (!%p141_p2), 113   ;;  %vm244_vm13 = vcmask (!%p141_p2), 1047684   ;;  %vm240_vm14 = vcmask (!%p141_p2), 130048   ;;  %vm247_vm15 = vcmask (!%p141_p2), 130052   ;;  %v377_v4 = vld [vmem:[%s725_s1] sm:$0xff] (!%p141_p2) }
   0x9   : > { %s621_s24 = smov (!%p141_p2), 112   ;;  %s622_s25 = smov (!%p141_p2), 111   ;;  %v187_v6 = vand.u32 (!%p141_p2), 15, %v181_v5  ;;  %v182_v7 = vadd.s32 (!%p141_p2), 128, %v181_v5 }
   0xb   : > { %vm658_vm0 = vcmp.gt.s32.totalorder (!%p141_p2), %v187_v6, 0  ;;  %v194_v9 = vand.u32 (!%p141_p2), 15, %v182_v7  ;;  %vm666_vm5 = vcmp.lt.s32.totalorder (!%p141_p2), %v187_v6, 15 }
   0xd   : > { %s737_s13 = smov (!%p167_p3, %s564_s13), 1  ;;  %vm671_vm8 = vcmp.gt.s32.totalorder %v194_v9, 0  ;;  %vm681_vm12 = vcmp.lt.s32.totalorder %v194_v9, 15 }
   0xe   : > { %s652_s14 = sshll.u32 %s737_s13, 3 }
   0xf   : > { %s171_s17 = scalar_lea.vmem %s724_s0, %s652_s14  ;;  %s175_s30 = scalar_lea.vmem %s726_s2, %s652_s14 }
  0x10   : > { %v271_v1 = vld [vmem:[%s171_s17] sm:$0xff]  ;;  %s179_s6 = scalar_lea.vmem %s727_s3, %s652_s14 }
  0x11   : > { %274 = vrot.lane.b32.xlu0 %v271_v1, %s615_s18  ;;  %v273_v2 = vcombine.high %v271_v1, %v271_v1  ;;  %218 = vrot.lane.b32.xlu1 %v271_v1, %s616_s19  ;;  %299 = vst [vmem:[#allocation2 + $0x20] sm:$0xf] %v271_v1  ;;  %v235_v3 = vcombine.low %v271_v1, %v271_v1 }
  0x13   : > { %300 = vst [vmem:[#allocation2 + $0x28] sm:$0xf] %v273_v2 }
  0x15   : > { %256 = vrot.lane.b32.xlu0 %v271_v1, %s617_s20  ;;  %220 = vrot.lane.b32.xlu1 %v273_v2, %s616_s19 }
  0x19   : > { %276 = vrot.lane.b32.xlu0 %v273_v2, %s615_s18  ;;  %258 = vrot.lane.b32.xlu1 %v273_v2, %s617_s20 }
  0x1d   : > { %236 = vrot.lane.b32.xlu0 %v235_v3, %s618_s21  ;;  %238 = vrot.lane.b32.xlu1 %v271_v1, %s618_s21 }
  0x21   : > { %306 = vrot.lane.b32.xlu0 %v273_v2, %s619_s22  ;;  %304 = vrot.lane.b32.xlu1 %v271_v1, %s619_s22 }
  0x25   : > { %330 = vrot.lane.b32.xlu0 %v273_v2, %s620_s23  ;;  %328 = vrot.lane.b32.xlu1 %v271_v1, %s620_s23 }
  0x29   : > { %348 = vrot.lane.b32.xlu0 %v271_v1, %s621_s24  ;;  %346 = vrot.lane.b32.xlu1 %v235_v3, %s621_s24 }
  0x2d   : > { %364 = vrot.lane.b32.xlu0 %v273_v2, %s622_s25  ;;  %362 = vrot.lane.b32.xlu1 %v271_v1, %s622_s25 }
  0x83   : > { %v275_v10 = vpop.permute.xlu0 %274  ;;  %v219_v11 = vpop.permute.xlu1 %218 }
  0x84   : > { %v282_v12 = vsel %vm658_vm0, %v275_v10, 0.0  ;;  %v226_v13 = vsel %vm658_vm0, %v219_v11, 0.0 }
  0x85   : > { %v286_v14 = vrot.slane %v282_v12, 4  ;;  %229 = vst.msk [vmem:[#allocation2] sm:$0xf] %vm228_vm1, %v226_v13  ;;  %vm308_vm1 = vcmask 1039360  }
  0x86   : > { %232 = vst.msk [vmem:[#allocation2] sm:$0xf] %vm231_vm2, %v614_v0  ;;  %vm321_vm2 = vcmask 1039364  }
  0x87   : > { %291 = vst.msk [vmem:[#allocation2 + $0x10] sm:$0xf0] %vm290_vm3, %v286_v14  ;;  %v257_v17 = vpop.permute.xlu0 %256  ;;  %v221_v18 = vpop.permute.xlu1 %220  ;;  %vm323_vm3 = vcmask 1048572  }
  0x88   : > { %294 = vst.msk [vmem:[#allocation2 + $0x10] sm:$0xf0] %vm293_vm4, %v614_v0  ;;  %v264_v19 = vsel %vm666_vm5, %v257_v17, 0.0  ;;  %v223_v20 = vsel %vm222_vm6, %v219_v11, %v221_v18  ;;  %vm332_vm4 = vcmask 924672   ;;  %vm339_vm6 = vcmask 920576  }
  0x89   : > { %267 = vst.msk [vmem:[#allocation2 + $0x10] sm:$0xf] %vm266_vm7, %v264_v19  ;;  %v227_v21 = vsel %vm671_vm8, %v223_v20, 0.0  ;;  %vm341_vm7 = vcmask 1044360  }
  0x8a   : > { %270 = vst.msk [vmem:[#allocation2 + $0x10] sm:$0xf] %vm269_vm9, %v614_v0  ;;  %230 = vst [vmem:[#allocation2 + $0x8] sm:$0xf] %v227_v21  ;;  %vm355_vm9 = vcmask 916484  }
  0x8b   : > { %v277_v23 = vpop.permute.xlu0 %276  ;;  %v259_v24 = vpop.permute.xlu1 %258 }
  0x8c   : > { %v279_v25 = vsel %vm278_vm10, %v275_v10, %v277_v23  ;;  %v261_v26 = vsel %vm260_vm11, %v257_v17, %v259_v24  ;;  %vm350_vm11 = vcmask 916480  }
  0x8d   : > { %v283_v27 = vsel %vm671_vm8, %v279_v25, 0.0  ;;  %v265_v28 = vsel %vm681_vm12, %v261_v26, 0.0 }
  0x8e   : > { %v287_v29 = vrot.slane %v283_v27, 4  ;;  %268 = vst [vmem:[#allocation2 + $0x18] sm:$0xf] %v265_v28 }
  0x8f   : > { %v237_v30 = vpop.permute.xlu0 %236  ;;  %v239_v31 = vpop.permute.xlu1 %238 }
  0x90   : > { %292 = vst [vmem:[#allocation2 + $0x18] sm:$0xf0] %v287_v29  ;;  %245 = vst.msk [vmem:[#allocation2] sm:$0xf0] %vm244_vm13, %v237_v30  ;;  %v241_v32 = vsel %vm240_vm14, %v237_v30, %v239_v31  ;;  %vm357_vm13 = vcmask 1048452   ;;  %vm373_vm14 = vcmask 904192  }
  0x91   : > { %248 = vst.msk [vmem:[#allocation2] sm:$0xf0] %vm247_vm15, %v614_v0  ;;  %246 = vst [vmem:[#allocation2 + $0x8] sm:$0xf0] %v241_v32  ;;  %v380_v40 = vld [vmem:[#allocation2 + $0x10] sm:$0xff]  ;;  %vm392_vm15 = vcmask 1043456  }
  0x93   : > { %v307_v33 = vpop.permute.xlu0 %306  ;;  %v305_v34 = vpop.permute.xlu1 %304 }
  0x94   : > { %v313_v35 = vsel %vm681_vm12, %v307_v33, 0.0  ;;  %v309_v36 = vsel %vm308_vm1, %v305_v34, %v307_v33 }
  0x95   : > { %v317_v37 = vrot.slane %v313_v35, 4  ;;  %v312_v38 = vsel %vm666_vm5, %v309_v36, 0.0 }
  0x96   : > { %v316_v39 = vrot.slane %v312_v38, 4 }
  0x97   : > { %322 = vst.msk [vmem:[#allocation2 + $0x28] sm:$0xf0] %vm321_vm2, %v317_v37  ;;  %v331_v41 = vpop.permute.xlu0 %330  ;;  %v329_v42 = vpop.permute.xlu1 %328  ;;  %v381_v43 = vld [vmem:[#allocation2 + $0x18] sm:$0xff] }
  0x98   : > { %324 = vst.msk [vmem:[#allocation2 + $0x28] sm:$0xf0] %vm323_vm3, %v614_v0  ;;  %320 = vst [vmem:[#allocation2 + $0x20] sm:$0xf0] %v316_v39  ;;  %v337_v44 = vsel %vm671_vm8, %v331_v41, 0.0  ;;  %v333_v45 = vsel %vm332_vm4, %v329_v42, %v331_v41  ;;  %v379_v46 = vld [vmem:[#allocation2 + $0x8] sm:$0xff] }
  0x99   : > { %v378_v47 = vld [vmem:[#allocation2] sm:$0xff]  ;;  %340 = vst.msk [vmem:[#allocation2 + $0x38] sm:$0xf] %vm339_vm6, %v337_v44  ;;  %v336_v48 = vsel %vm658_vm0, %v333_v45, 0.0  ;;  %v579_v49 = vpack.c.bf16 %v381_v43, %v379_v46  ;;  %vm366_vm8 = vcmask 908288   ;;  %vm375_vm0 = vcmask 1044344  }
  0x9a   : > { %v581_v50 = vpack.c.bf16 %v380_v40, %v378_v47  ;;  %342 = vst.msk [vmem:[#allocation2 + $0x38] sm:$0xf] %vm341_vm7, %v614_v0  ;;  %338 = vst [vmem:[#allocation2 + $0x30] sm:$0xf] %v336_v48 }
  0x9b   : > { %v349_v51 = vpop.permute.xlu0 %348  ;;  %580 = vmatprep.subr.bf16.mxu0 %v579_v49  ;;  %v347_v52 = vpop.permute.xlu1 %346 }
  0x9c   : > { %356 = vst.msk [vmem:[#allocation2 + $0x38] sm:$0xf0] %vm355_vm9, %v349_v51  ;;  %v351_v53 = vsel %vm350_vm11, %v347_v52, %v349_v51  ;;  %582 = vmatpush1.bf16.msra.mxu0 %v581_v50 }
  0x9d   : > { %358 = vst.msk [vmem:[#allocation2 + $0x38] sm:$0xf0] %vm357_vm13, %v614_v0  ;;  %354 = vst [vmem:[#allocation2 + $0x30] sm:$0xf0] %v351_v53 }
  0x9f   : > { %v365_v54 = vpop.permute.xlu0 %364  ;;  %v363_v55 = vpop.permute.xlu1 %362  ;;  %v383_v59 = vld [vmem:[#allocation2 + $0x28] sm:$0xff]  ;;  %v382_v61 = vld [vmem:[#allocation2 + $0x20] sm:$0xff] }
  0xa0   : > { %v371_v56 = vsel %vm681_vm12, %v365_v54, 0.0  ;;  %v367_v57 = vsel %vm366_vm8, %v363_v55, %v365_v54 }
  0xa1   : > { %374 = vst.msk [vmem:[#allocation2 + $0x48] sm:$0xf] %vm373_vm14, %v371_v56  ;;  %v370_v58 = vsel %vm666_vm5, %v367_v57, 0.0  ;;  %vm388_vm5 = vcmask 293888  }
  0xa2   : > { %376 = vst.msk [vmem:[#allocation2 + $0x48] sm:$0xf] %vm375_vm0, %v614_v0  ;;  %372 = vst [vmem:[#allocation2 + $0x40] sm:$0xf] %v370_v58 }
  0xa4   : > { %v385_v60 = vld [vmem:[#allocation2 + $0x38] sm:$0xff]  ;;  %v384_v62 = vld [vmem:[#allocation2 + $0x30] sm:$0xff] }
  0xa5   : > { %v583_v63 = vpack.c.bf16 %v385_v60, %v383_v59  ;;  %v585_v1 = vpack.c.bf16 %v384_v62, %v382_v61 }
  0xa7   : > { %584 = vmatprep.subr.bf16.mxu0 %v583_v63 }
  0xa8   : > { %586 = vmatpush1.bf16.msra.mxu0 %v585_v1 }
  0xa9   : > { %v387_v2 = vld [vmem:[#allocation2 + $0x48] sm:$0xf]  ;;  %v386_v3 = vld [vmem:[#allocation2 + $0x40] sm:$0xf] }
  0xaa   : > { %573 = vmatprep.subr.msk.mxu0 %vm392_vm15, %v387_v2 }
  0xac   : > { %574 = vmatpush1.msk.msra.mxu0 %vm392_vm15, %v386_v3 }
  0xad   : > { %575 = vmatmul.mubr.msk.f32.vlgmr.msra.gmra.mrb[0].mxu0 %vm388_vm5, %v377_v4 }
 0x180   : > { %v465_v0 = vpop.f32.mrb[0].mxu0 }
 0x181   : > { %v474_v5 = vmul.f32 %v465_v0, %v465_v0  ;;  %v467_v6 = vpop.f32.mrb[1].mxu0 }
 0x182   : > { %v470_v7 = vadd.f32 %v467_v6, %v465_v0  ;;  %v475_v8 = vmul.f32 %v467_v6, %v467_v6 }
 0x184   : > { %471 = vadd.xlane.f32.xlu0 %v470_v7  ;;  %v476_v9 = vadd.f32 %v475_v8, %v474_v5 }
 0x186   : > { %477 = vadd.xlane.f32.xlu1 %v476_v9 }
 0x211   : > { %v472_v10 = vpop.xlane.xlu0 %471 }
 0x212   : > { %473 = vst.msk [vmem:[%s175_s30] sm:$0xff] %vm278_vm10, %v472_v10 }
 0x213   : > { %v478_v11 = vpop.xlane.xlu1 %477 }
 0x214   : > { %479 = vst.msk [vmem:[%s179_s6] sm:$0xff] %vm278_vm10, %v478_v11 }
 0x215 PF: > { %s14_s12 = sadd.s32 1, %s612_s12  }
 0x216   : > { %p11_p4 = scmp.ge.s32.totalorder %s14_s12, 4  }
 0x218   :  { %13 = sbr.rel (!%p11_p4) target bundleno = 1 (0x1), region = 70 }

// kernel: encoder_block.3
= control target key start
LH: loop header
LB: loop body
LE: loop exit
PB: predicated region body
PF: predicated region fallthrough
CT: control target
= control target key end

     0   :  { %s2159_s15 = smov 0   ;;  %s2390_s0 = inlined_call_operand.vmem [shape: f32[2,4,256], index: 0, kind: input, shape index: {}]   ;;  %s2391_s1 = inlined_call_operand.vmem [shape: f32[8,36], index: 1, kind: input, shape index: {}]   ;;  %s2392_s2 = inlined_call_operand.vmem [shape: f32[8,1], index: 2, kind: input, shape index: {}]   ;;  %s2393_s3 = inlined_call_operand.vmem [shape: f32[8,1], index: 3, kind: input, shape index: {}]   ;;  %s2394_s4 = inlined_call_operand.vmem [shape: f32[2,8,64], index: 4, kind: output, shape index: {}]  }
   0x1 LB: > { %s1790_s16 = sadd.s32 4294967295, %s2111_s15   ;;  %p1794_p0 = scmp.ge.s32.totalorder %s2111_s15, 1  ;;  %s2111_s15 = sphi %s2159_s15, %s14_s15  }
   0x2   : > { %p162_p1 = scmp.lt.s32.totalorder %s2111_s15, 3 }
   0x4   : > { %p163_p2 = pnand %p1794_p0, %p162_p1 }
   0x5   : > { %p187_p3 = scmp.lt.s32.totalorder (!%p163_p2), %s1790_s16, 1  ;;  %v2113_v0 = vmov (!%p163_p2), 0.0   ;;  %s2114_s21 = smov (!%p163_p2), 1   ;;  %v2122_v4 = vmov (!%p163_p2), 0   ;;  %v486_v5 = vld [vmem:[%s2392_s2] sm:$0xff] (!%p163_p2)  ;;  %v196_v7 = vlaneseq (!%p163_p2)  ;;  %vm244_vm1 = vcmask (!%p163_p2), 1043592  }
   0x6   : > { %166 = sbr.rel (%p163_p2) target bundleno = 978 (0x3d2), region = 36  ;;  %479 = vmatprep.mubr.f32.mxu0 (!%p163_p2), %v2113_v0  ;;  %s2115_s22 = smov (!%p163_p2), 17   ;;  %2101 = vset.pattern.permute.xlu0 (!%p163_p2), %v2122_v4  ;;  %v494_v6 = vld [vmem:[%s2393_s3] sm:$0xff] (!%p163_p2)  ;;  %vm247_vm2 = vcmask (!%p163_p2), 134144   ;;  %vm306_vm3 = vcmask (!%p163_p2), 1047564   ;;  %vm309_vm4 = vcmask (!%p163_p2), 7172  }
   0x7   : > { %s2116_s23 = smov (!%p163_p2), 15   ;;  %s2117_s24 = smov (!%p163_p2), 16   ;;  %2102 = vset.pattern.permute.xlu1 (!%p163_p2), %v2122_v4  ;;  %v2187_v8 = vand.u32 (!%p163_p2), 127, %v196_v7  ;;  %vm238_vm6 = vcmask (!%p163_p2), 138240   ;;  %vm282_vm7 = vcmask (!%p163_p2), 1043576   ;;  %vm285_vm9 = vcmask (!%p163_p2), 117760  }
   0x8   : > { %s2118_s25 = smov (!%p163_p2), 127   ;;  %s2119_s26 = smov (!%p163_p2), 113   ;;  %vm294_vm10 = vcmask (!%p163_p2), 7168   ;;  %vm276_vm11 = vcmask (!%p163_p2), 121856   ;;  %vm260_vm13 = vcmask (!%p163_p2), 1047684   ;;  %vm256_vm14 = vcmask (!%p163_p2), 130048  }
   0x9   : > { %s2120_s27 = smov (!%p163_p2), 112   ;;  %s2121_s28 = smov (!%p163_p2), 111   ;;  %v203_v9 = vand.u32 (!%p163_p2), 15, %v2187_v8  ;;  %v198_v10 = vadd.s32 (!%p163_p2), 128, %v2187_v8  ;;  %vm263_vm15 = vcmask (!%p163_p2), 130052   ;;  %v511_v11 = vmul.u32 (!%p163_p2), 2, %v2187_v8 }
   0xa   : > { %s2126_s9 = smov (!%p163_p2), 64   ;;  %s2127_s10 = smov (!%p163_p2), 96  }
   0xb   : > { %vm2191_vm0 = vcmp.gt.s32.totalorder (!%p163_p2), %v203_v9, 0  ;;  %v210_v12 = vand.u32 (!%p163_p2), 15, %v198_v10  ;;  %vm2199_vm5 = vcmp.lt.s32.totalorder (!%p163_p2), %v203_v9, 15  ;;  %v393_v9 = vld [vmem:[%s2391_s1] sm:$0xff] (!%p163_p2)  ;;  %v509_v10 = vshrl.u32 (!%p163_p2), %v196_v7, 7  ;;  %s2128_s11 = smov (!%p163_p2), 32  }
   0xc   : > { %v518_v7 = vadd.s32 (!%p163_p2), 1, %v511_v11  ;;  %s2129_s18 = smov (!%p163_p2), 8   ;;  %s2132_s19 = smov (!%p163_p2), 48  }
   0xd   : > { %s2408_s16 = smov (!%p187_p3, %s1790_s16), 1  ;;  %vm2204_vm8 = vcmp.gt.s32.totalorder %v210_v12, 0  ;;  %vm2214_vm12 = vcmp.lt.s32.totalorder %v210_v12, 15  ;;  %v510_v12 = vadd.s32 8, %v509_v10 }
   0xe   : > { %s1855_s17 = sshll.u32 %s2408_s16, 3  ;;  %s2130_s16 = smov 24  }
   0xf   : > { %s191_s20 = scalar_lea.vmem %s2390_s0, %s1855_s17  ;;  %s2375_s14 = scalar_lea.vmem %s2394_s4, %s1855_s17 }
  0x10   : > { %v287_v1 = vld [vmem:[%s191_s20] sm:$0xff]  ;;  %s2131_s17 = smov 40   ;;  %s2133_s20 = smov 56  }
  0x11   : > { %290 = vrot.lane.b32.xlu0 %v287_v1, %s2114_s21  ;;  %v289_v2 = vcombine.high %v287_v1, %v287_v1  ;;  %234 = vrot.lane.b32.xlu1 %v287_v1, %s2115_s22  ;;  %315 = vst [vmem:[#allocation2 + $0x20] sm:$0xf] %v287_v1  ;;  %v251_v3 = vcombine.low %v287_v1, %v287_v1 }
  0x13   : > { %316 = vst [vmem:[#allocation2 + $0x28] sm:$0xf] %v289_v2 }
  0x15   : > { %272 = vrot.lane.b32.xlu0 %v287_v1, %s2116_s23  ;;  %236 = vrot.lane.b32.xlu1 %v289_v2, %s2115_s22 }
  0x19   : > { %292 = vrot.lane.b32.xlu0 %v289_v2, %s2114_s21  ;;  %274 = vrot.lane.b32.xlu1 %v289_v2, %s2116_s23 }
  0x1d   : > { %252 = vrot.lane.b32.xlu0 %v251_v3, %s2117_s24  ;;  %254 = vrot.lane.b32.xlu1 %v287_v1, %s2117_s24 }
  0x21   : > { %322 = vrot.lane.b32.xlu0 %v289_v2, %s2118_s25  ;;  %320 = vrot.lane.b32.xlu1 %v287_v1, %s2118_s25 }
  0x25   : > { %346 = vrot.lane.b32.xlu0 %v289_v2, %s2119_s26  ;;  %344 = vrot.lane.b32.xlu1 %v287_v1, %s2119_s26 }
  0x29   : > { %364 = vrot.lane.b32.xlu0 %v287_v1, %s2120_s27  ;;  %362 = vrot.lane.b32.xlu1 %v251_v3, %s2120_s27 }
  0x2d   : > { %380 = vrot.lane.b32.xlu0 %v289_v2, %s2121_s28  ;;  %378 = vrot.lane.b32.xlu1 %v287_v1, %s2121_s28 }
  0x31   : > { %489 = vperm.xlu0 %2101, %v486_v5   ;;  %497 = vperm.xlu1 %2102, %v494_v6  }
  0x83   : > { %v291_v13 = vpop.permute.xlu0 %290  ;;  %v235_v14 = vpop.permute.xlu1 %234 }
  0x84   : > { %v298_v15 = vsel %vm2191_vm0, %v291_v13, 0.0  ;;  %v242_v16 = vsel %vm2191_vm0, %v235_v14, 0.0 }
  0x85   : > { %v302_v17 = vrot.slane %v298_v15, 4  ;;  %245 = vst.msk [vmem:[#allocation2] sm:$0xf] %vm244_vm1, %v242_v16  ;;  %vm324_vm1 = vcmask 1039360   ;;  %v2124_v15 = vmov 1.0|1.0  }
  0x86   : > { %248 = vst.msk [vmem:[#allocation2] sm:$0xf] %vm247_vm2, %v2113_v0  ;;  %vm337_vm2 = vcmask 1039364  }
  0x87   : > { %307 = vst.msk [vmem:[#allocation2 + $0x10] sm:$0xf0] %vm306_vm3, %v302_v17  ;;  %v273_v20 = vpop.permute.xlu0 %272  ;;  %v237_v21 = vpop.permute.xlu1 %236  ;;  %vm339_vm3 = vcmask 1048572  }
  0x88   : > { %310 = vst.msk [vmem:[#allocation2 + $0x10] sm:$0xf0] %vm309_vm4, %v2113_v0  ;;  %v280_v22 = vsel %vm2199_vm5, %v273_v20, 0.0  ;;  %v239_v23 = vsel %vm238_vm6, %v235_v14, %v237_v21  ;;  %vm348_vm4 = vcmask 924672   ;;  %vm355_vm6 = vcmask 920576  }
  0x89   : > { %283 = vst.msk [vmem:[#allocation2 + $0x10] sm:$0xf] %vm282_vm7, %v280_v22  ;;  %v243_v24 = vsel %vm2204_vm8, %v239_v23, 0.0  ;;  %vm357_vm7 = vcmask 1044360  }
  0x8a   : > { %286 = vst.msk [vmem:[#allocation2 + $0x10] sm:$0xf] %vm285_vm9, %v2113_v0  ;;  %246 = vst [vmem:[#allocation2 + $0x8] sm:$0xf] %v243_v24  ;;  %vm371_vm9 = vcmask 916484  }
  0x8b   : > { %v293_v26 = vpop.permute.xlu0 %292  ;;  %v275_v27 = vpop.permute.xlu1 %274 }
  0x8c   : > { %v295_v28 = vsel %vm294_vm10, %v291_v13, %v293_v26  ;;  %v277_v29 = vsel %vm276_vm11, %v273_v20, %v275_v27  ;;  %vm366_vm10 = vcmask 916480   ;;  %vm373_vm11 = vcmask 1048452  }
  0x8d   : > { %v299_v30 = vsel %vm2204_vm8, %v295_v28, 0.0  ;;  %v281_v31 = vsel %vm2214_vm12, %v277_v29, 0.0  ;;  %v2123_v13 = vmov 0.0|0.0  }
  0x8e   : > { %v303_v32 = vrot.slane %v299_v30, 4  ;;  %284 = vst [vmem:[#allocation2 + $0x18] sm:$0xf] %v281_v31  ;;  %2024 = vmatprep.subr.bf16.mxu1 %v2123_v13 }
  0x8f   : > { %v253_v33 = vpop.permute.xlu0 %252  ;;  %v255_v34 = vpop.permute.xlu1 %254 }
  0x90   : > { %308 = vst [vmem:[#allocation2 + $0x18] sm:$0xf0] %v303_v32  ;;  %261 = vst.msk [vmem:[#allocation2] sm:$0xf0] %vm260_vm13, %v253_v33  ;;  %v257_v35 = vsel %vm256_vm14, %v253_v33, %v255_v34  ;;  %vm389_vm13 = vcmask 904192  }
  0x91   : > { %264 = vst.msk [vmem:[#allocation2] sm:$0xf0] %vm263_vm15, %v2113_v0  ;;  %262 = vst [vmem:[#allocation2 + $0x8] sm:$0xf0] %v257_v35  ;;  %v396_v43 = vld [vmem:[#allocation2 + $0x10] sm:$0xff]  ;;  %vm408_vm15 = vcmask 1043456  }
  0x93   : > { %v323_v36 = vpop.permute.xlu0 %322  ;;  %v321_v37 = vpop.permute.xlu1 %320 }
  0x94   : > { %v329_v38 = vsel %vm2214_vm12, %v323_v36, 0.0  ;;  %v325_v39 = vsel %vm324_vm1, %v321_v37, %v323_v36  ;;  %vm513_vm1 = vcmp.eq.s32.totalorder %v510_v12, %v511_v11 }
  0x95   : > { %v333_v40 = vrot.slane %v329_v38, 4  ;;  %v328_v41 = vsel %vm2199_vm5, %v325_v39, 0.0 }
  0x96   : > { %v332_v42 = vrot.slane %v328_v41, 4 }
  0x97   : > { %338 = vst.msk [vmem:[#allocation2 + $0x28] sm:$0xf0] %vm337_vm2, %v333_v40  ;;  %v347_v44 = vpop.permute.xlu0 %346  ;;  %v345_v45 = vpop.permute.xlu1 %344  ;;  %v397_v46 = vld [vmem:[#allocation2 + $0x18] sm:$0xff] }
  0x98   : > { %340 = vst.msk [vmem:[#allocation2 + $0x28] sm:$0xf0] %vm339_vm3, %v2113_v0  ;;  %336 = vst [vmem:[#allocation2 + $0x20] sm:$0xf0] %v332_v42  ;;  %v353_v47 = vsel %vm2204_vm8, %v347_v44, 0.0  ;;  %v349_v48 = vsel %vm348_vm4, %v345_v45, %v347_v44  ;;  %v395_v49 = vld [vmem:[#allocation2 + $0x8] sm:$0xff]  ;;  %vm519_vm4 = vcmp.eq.s32.totalorder %v509_v10, %v518_v7 }
  0x99   : > { %v394_v50 = vld [vmem:[#allocation2] sm:$0xff]  ;;  %356 = vst.msk [vmem:[#allocation2 + $0x38] sm:$0xf] %vm355_vm6, %v353_v47  ;;  %v352_v51 = vsel %vm2191_vm0, %v349_v48, 0.0  ;;  %v2016_v52 = vpack.c.bf16 %v397_v46, %v395_v49  ;;  %vm382_vm8 = vcmask 908288   ;;  %vm391_vm0 = vcmask 1044344  }
  0x9a   : > { %v2018_v53 = vpack.c.bf16 %v396_v43, %v394_v50  ;;  %358 = vst.msk [vmem:[#allocation2 + $0x38] sm:$0xf] %vm357_vm7, %v2113_v0  ;;  %354 = vst [vmem:[#allocation2 + $0x30] sm:$0xf] %v352_v51  ;;  %vm2125_vm3 = vmmov 0   ;;  %vm520_vm6 = vcmp.eq.s32.totalorder %v510_v12, %v518_v7 }
  0x9b   : > { %v365_v54 = vpop.permute.xlu0 %364  ;;  %2017 = vmatprep.subr.bf16.mxu0 %v2016_v52  ;;  %v363_v55 = vpop.permute.xlu1 %362  ;;  %1908 = vmatprep.mubr.msk.f32.mxu1 %vm2125_vm3, %v2113_v0  ;;  %vm2260_vm7 = vmpackc.low %vm520_vm6, %vm519_vm4 }
  0x9c   : > { %372 = vst.msk [vmem:[#allocation2 + $0x38] sm:$0xf0] %vm371_vm9, %v365_v54  ;;  %v367_v56 = vsel %vm366_vm10, %v363_v55, %v365_v54  ;;  %2019 = vmatpush1.bf16.msra.mxu0 %v2018_v53 }
  0x9d   : > { %374 = vst.msk [vmem:[#allocation2 + $0x38] sm:$0xf0] %vm373_vm11, %v2113_v0  ;;  %370 = vst [vmem:[#allocation2 + $0x30] sm:$0xf0] %v367_v56  ;;  %vm674_vm11 = vcmask 64512  }
  0x9f   : > { %v381_v57 = vpop.permute.xlu0 %380  ;;  %v379_v58 = vpop.permute.xlu1 %378  ;;  %v399_v62 = vld [vmem:[#allocation2 + $0x28] sm:$0xff]  ;;  %v398_v1 = vld [vmem:[#allocation2 + $0x20] sm:$0xff] }
  0xa0   : > { %v387_v59 = vsel %vm2214_vm12, %v381_v57, 0.0  ;;  %v383_v60 = vsel %vm382_vm8, %v379_v58, %v381_v57  ;;  %vm512_vm12 = vcmp.eq.s32.totalorder %v509_v10, %v511_v11  ;;  %vm976_vm8 = vcmask 195712  }
  0xa1   : > { %390 = vst.msk [vmem:[#allocation2 + $0x48] sm:$0xf] %vm389_vm13, %v387_v59  ;;  %v386_v61 = vsel %vm2199_vm5, %v383_v60, 0.0  ;;  %vm404_vm5 = vcmask 293888   ;;  %vm2248_vm2 = vmpackc.low %vm513_vm1, %vm512_vm12  ;;  %vm1127_vm13 = vcmask 261312   ;;  %vm1735_vm12 = vcmask 523712  }
  0xa2   : > { %392 = vst.msk [vmem:[#allocation2 + $0x48] sm:$0xf] %vm391_vm0, %v2113_v0  ;;  %388 = vst [vmem:[#allocation2 + $0x40] sm:$0xf] %v386_v61  ;;  %2026 = vmatpush3.bf16.msk.msra.mxu1 %vm2248_vm2, %v2124_v15  ;;  %vm1282_vm0 = vcmask 326912  }
  0xa3   : > { %2027 = vmatprep.subr.bf16.mxu1 %v2123_v13 }
  0xa4   : > { %v401_v63 = vld [vmem:[#allocation2 + $0x38] sm:$0xff]  ;;  %v400_v2 = vld [vmem:[#allocation2 + $0x30] sm:$0xff] }
  0xa5   : > { %v2020_v3 = vpack.c.bf16 %v401_v63, %v399_v62  ;;  %v2022_v4 = vpack.c.bf16 %v400_v2, %v398_v1 }
  0xa7   : > { %2021 = vmatprep.subr.bf16.mxu0 %v2020_v3 }
  0xa8   : > { %2023 = vmatpush1.bf16.msra.mxu0 %v2022_v4 }
  0xa9   : > { %v403_v5 = vld [vmem:[#allocation2 + $0x48] sm:$0xf]  ;;  %v402_v6 = vld [vmem:[#allocation2 + $0x40] sm:$0xf] }
  0xaa   : > { %1798 = vmatprep.subr.msk.mxu0 %vm408_vm15, %v403_v5 }
  0xac   : > { %1799 = vmatpush1.msk.msra.mxu0 %vm408_vm15, %v402_v6  ;;  %vm1433_vm15 = vcmask 392512  }
  0xad   : > { %1800 = vmatmul.mubr.msk.f32.vlgmr.msra.gmra.mrb[0].mxu0 %vm404_vm5, %v393_v9  ;;  %2033 = vmatprep.subr.bf16.mxu0 %v2123_v13  ;;  %vm1584_vm5 = vcmask 458112  }
  0xae   : > { %1929 = vmatprep.mubr.msk.f32.mxu0 %vm2125_vm3, %v2113_v0  ;;  %2035 = vmatpush3.bf16.msk.msra.mxu0 %vm2260_vm7, %v2124_v15 }
  0xaf   : > { %2039 = vmatprep.subr.bf16.mxu0 %v2123_v13 }
  0xb0   : > { %v490_v8 = vpop.permute.xlu0 %489  ;;  %v498_v18 = vpop.permute.xlu1 %497 }
 0x180   : > { %v481_v17 = vpop.f32.mrb[0].mxu0 }
 0x181   : > { %v492_v19 = vmul.f32 %v490_v8, %v481_v17  ;;  %v483_v20 = vpop.f32.mrb[1].mxu0 }
 0x182   : > { %v493_v21 = vmul.f32 %v490_v8, %v483_v20 }
 0x183   : > { %v500_v22 = vadd.f32 %v498_v18, %v492_v19 }
 0x184   : > { %v501_v23 = vadd.f32 %v498_v18, %v493_v21 }
 0x185   : > { %vm502_vm9 = vcmp.gt.f32.partialorder %v500_v22, 0.0  ;;  %v504_v24 = vmul.f32 0.2, %v500_v22 }
 0x186   : > { %vm503_vm10 = vcmp.gt.f32.partialorder %v501_v23, 0.0  ;;  %v505_v25 = vmul.f32 0.2, %v501_v23 }
 0x187   : > { %v506_v26 = vsel %vm502_vm9, %v500_v22, %v504_v24 }
 0x188   : > { %526 = vrot.lane.b32.xlu1 %v506_v26, %s2120_s27  ;;  %v507_v27 = vsel %vm503_vm10, %v501_v23, %v505_v25 }
 0x189   : > { %1130 = vrot.lane.b32.xlu0 %v507_v27, %s2120_s27 }
 0x1fa   : > { %v527_v28 = vpop.permute.xlu1 %526 }
 0x1fb   : > { %v529_v29 = vmax.f32 %v506_v26, %v527_v28  ;;  %v1131_v30 = vpop.permute.xlu0 %1130 }
 0x1fc   : > { %v1133_v31 = vmax.f32 %v507_v27, %v1131_v30 }
 0x1fd   : > { %827 = vrot.lane.b32.xlu0 %v529_v29, %s2126_s9  ;;  %676 = vrot.lane.b32.xlu1 %v529_v29, %s2127_s10 }
 0x1fe   : > { %1909 = vmatmul.mubr.msk.f32.vlgmr.msra.gmra.mrb[0].mxu1 %vm256_vm14, %v529_v29 }
 0x1ff   : > { %2029 = vmatpush3.bf16.msk.msra.mxu1 %vm2260_vm7, %v2124_v15  ;;  %1915 = vmatprep.mubr.msk.f32.mxu1 %vm2125_vm3, %v2113_v0 }
 0x200   : > { %2030 = vmatprep.subr.bf16.mxu1 %v2123_v13 }
 0x201   : > { %1284 = vrot.lane.b32.xlu0 %v1133_v31, %s2127_s10  ;;  %978 = vrot.lane.b32.xlu1 %v529_v29, %s2128_s11 }
 0x202   : > { %1916 = vmatmul.mubr.msk.f32.vlgmr.msra.gmra.mrb[2].mxu1 %vm256_vm14, %v529_v29 }
 0x203   : > { %2032 = vmatpush3.bf16.msk.msra.mxu1 %vm2248_vm2, %v2124_v15  ;;  %1922 = vmatprep.mubr.msk.f32.mxu1 %vm2125_vm3, %v2113_v0 }
 0x204   : > { %2036 = vmatprep.subr.bf16.mxu1 %v2123_v13 }
 0x205   : > { %1586 = vrot.lane.b32.xlu0 %v1133_v31, %s2128_s11  ;;  %1435 = vrot.lane.b32.xlu1 %v1133_v31, %s2126_s9 }
 0x26f   : > { %v677_v32 = vpop.permute.xlu1 %676  ;;  %v828_v33 = vpop.permute.xlu0 %827 }
 0x270   : > { %1923 = vmatmul.mubr.msk.f32.vlgmr.msra.gmra.mrb[4].mxu1 %vm256_vm14, %v677_v32  ;;  %1930 = vmatmul.mubr.msk.f32.vlgmr.msra.gmra.mrb[2].mxu0 %vm256_vm14, %v677_v32 }
 0x271   : > { %2038 = vmatpush3.bf16.msk.msra.mxu1 %vm2248_vm2, %v2124_v15  ;;  %2041 = vmatpush3.bf16.msk.msra.mxu0 %vm2260_vm7, %v2124_v15 }
 0x272   : > { %1943 = vmatprep.mubr.msk.f32.mxu0 %vm2125_vm3, %v2113_v0  ;;  %2045 = vmatprep.subr.bf16.mxu0 %v2123_v13 }
 0x273   : > { %1936 = vmatprep.mubr.msk.f32.mxu1 %vm2125_vm3, %v2113_v0  ;;  %2042 = vmatprep.subr.bf16.mxu1 %v2123_v13  ;;  %v979_v34 = vpop.permute.xlu1 %978  ;;  %v1285_v35 = vpop.permute.xlu0 %1284 }
 0x274   : > { %1937 = vmatmul.mubr.msk.f32.vlgmr.msra.gmra.mrb[6].mxu1 %vm256_vm14, %v828_v33  ;;  %1944 = vmatmul.mubr.msk.f32.vlgmr.msra.gmra.mrb[4].mxu0 %vm256_vm14, %v828_v33 }
 0x275   : > { %2044 = vmatpush3.bf16.msk.msra.mxu1 %vm2248_vm2, %v2124_v15  ;;  %2047 = vmatpush3.bf16.msk.msra.mxu0 %vm2260_vm7, %v2124_v15 }
 0x276   : > { %1957 = vmatprep.mubr.msk.f32.mxu0 %vm2125_vm3, %v2113_v0  ;;  %2051 = vmatprep.subr.bf16.mxu0 %v2123_v13 }
 0x277   : > { %1950 = vmatprep.mubr.msk.f32.mxu1 %vm2125_vm3, %v2113_v0  ;;  %2048 = vmatprep.subr.bf16.mxu1 %v2123_v13  ;;  %v1436_v36 = vpop.permute.xlu1 %1435  ;;  %v1587_v37 = vpop.permute.xlu0 %1586 }
 0x278   : > { %1951 = vmatmul.mubr.msk.f32.vlgmr.msra.gmra.mrb[8].mxu1 %vm256_vm14, %v979_v34  ;;  %1958 = vmatmul.mubr.msk.f32.vlgmr.msra.gmra.mrb[6].mxu0 %vm256_vm14, %v979_v34 }
 0x279   : > { %2050 = vmatpush3.bf16.msk.msra.mxu1 %vm2248_vm2, %v2124_v15  ;;  %2053 = vmatpush3.bf16.msk.msra.mxu0 %vm2260_vm7, %v2124_v15 }
 0x27a   : > { %1964 = vmatprep.mubr.msk.f32.mxu1 %vm2125_vm3, %v2113_v0  ;;  %1971 = vmatprep.mubr.msk.f32.mxu0 %vm2125_vm3, %v2113_v0 }
 0x27b   : > { %2054 = vmatprep.subr.bf16.mxu1 %v2123_v13  ;;  %2057 = vmatprep.subr.bf16.mxu0 %v2123_v13 }
 0x27c   : > { %1965 = vmatmul.mubr.msk.f32.vlgmr.msra.gmra.mrb[10].mxu1 %vm256_vm14, %v1133_v31  ;;  %1972 = vmatmul.mubr.msk.f32.vlgmr.msra.gmra.mrb[8].mxu0 %vm256_vm14, %v1133_v31 }
 0x27d   : > { %2056 = vmatpush3.bf16.msk.msra.mxu1 %vm2248_vm2, %v2124_v15  ;;  %2059 = vmatpush3.bf16.msk.msra.mxu0 %vm2260_vm7, %v2124_v15 }
 0x27e   : > { %1978 = vmatprep.mubr.msk.f32.mxu1 %vm2125_vm3, %v2113_v0  ;;  %1985 = vmatprep.mubr.msk.f32.mxu0 %vm2125_vm3, %v2113_v0 }
 0x27f   : > { %2060 = vmatprep.subr.bf16.mxu1 %v2123_v13  ;;  %2063 = vmatprep.subr.bf16.mxu0 %v2123_v13 }
 0x280   : > { %1979 = vmatmul.mubr.msk.f32.vlgmr.msra.gmra.mrb[12].mxu1 %vm256_vm14, %v1285_v35  ;;  %1986 = vmatmul.mubr.msk.f32.vlgmr.msra.gmra.mrb[10].mxu0 %vm256_vm14, %v1285_v35 }
 0x281   : > { %2062 = vmatpush3.bf16.msk.msra.mxu1 %vm2248_vm2, %v2124_v15  ;;  %2065 = vmatpush3.bf16.msk.msra.mxu0 %vm2260_vm7, %v2124_v15 }
 0x282   : > { %1992 = vmatprep.mubr.msk.f32.mxu1 %vm2125_vm3, %v2113_v0  ;;  %1999 = vmatprep.mubr.msk.f32.mxu0 %vm2125_vm3, %v2113_v0 }
 0x283   : > { %2066 = vmatprep.subr.bf16.mxu1 %v2123_v13  ;;  %2069 = vmatprep.subr.bf16.mxu0 %v2123_v13 }
 0x284   : > { %1993 = vmatmul.mubr.msk.f32.vlgmr.msra.gmra.mrb[14].mxu1 %vm256_vm14, %v1436_v36  ;;  %2000 = vmatmul.mubr.msk.f32.vlgmr.msra.gmra.mrb[12].mxu0 %vm256_vm14, %v1436_v36 }
 0x285   : > { %2068 = vmatpush3.bf16.msk.msra.mxu1 %vm2248_vm2, %v2124_v15  ;;  %2071 = vmatpush3.bf16.msk.msra.mxu0 %vm2260_vm7, %v2124_v15 }
 0x286   : > { %2006 = vmatprep.mubr.msk.f32.mxu1 %vm2125_vm3, %v2113_v0  ;;  %2013 = vmatprep.mubr.msk.f32.mxu0 %vm2125_vm3, %v2113_v0 }
 0x288   : > { %2007 = vmatmul.mubr.msk.f32.vlgmr.msra.gmra.mrb[16].mxu1 %vm256_vm14, %v1587_v37  ;;  %2014 = vmatmul.mubr.msk.f32.vlgmr.msra.gmra.mrb[14].mxu0 %vm256_vm14, %v1587_v37  ;;  %vm825_vm14 = vcmask 130112  }
 0x2d1   : > { %v599_v38 = vpop.f32.mrb[0].mxu1 }
 0x2d2   : > { %v1910_v39 = vpop.f32.mrb[1].mxu1 }
 0x2d5   : > { %v669_v40 = vpop.f32.mrb[2].mxu1 }
 0x2d6   : > { %v673_v41 = vmax.f32 %v599_v38, %v669_v40  ;;  %v1917_v42 = vpop.f32.mrb[3].mxu1 }
 0x2d8   : > { %675 = vst.msk [vmem:[%s2375_s14] sm:$0xff] %vm674_vm11, %v673_v41 }
 0x343   : > { %v746_v0 = vpop.f32.mrb[4].mxu1  ;;  %v816_v43 = vpop.f32.mrb[2].mxu0 }
 0x344   : > { %v820_v44 = vmax.f32 %v746_v0, %v816_v43  ;;  %v1924_v45 = vpop.f32.mrb[5].mxu1  ;;  %v1931_v46 = vpop.f32.mrb[3].mxu0 }
 0x346   : > { %822 = vrot.lane.b32.xlu1 %v820_v44, %s2129_s18 }
 0x347   : > { %v897_v47 = vpop.f32.mrb[6].mxu1  ;;  %v967_v48 = vpop.f32.mrb[4].mxu0 }
 0x348   : > { %v971_v49 = vmax.f32 %v897_v47, %v967_v48  ;;  %v1938_v50 = vpop.f32.mrb[7].mxu1  ;;  %v1945_v51 = vpop.f32.mrb[5].mxu0 }
 0x34a   : > { %973 = vrot.lane.b32.xlu0 %v971_v49, %s2117_s24 }
 0x34b   : > { %v1048_v52 = vpop.f32.mrb[8].mxu1  ;;  %v1118_v53 = vpop.f32.mrb[6].mxu0 }
 0x34c   : > { %v1122_v54 = vmax.f32 %v1048_v52, %v1118_v53  ;;  %v1952_v55 = vpop.f32.mrb[9].mxu1  ;;  %v1959_v56 = vpop.f32.mrb[7].mxu0 }
 0x34e   : > { %1124 = vrot.lane.b32.xlu1 %v1122_v54, %s2130_s16 }
 0x34f   : > { %v1203_v57 = vpop.f32.mrb[10].mxu1  ;;  %v1273_v58 = vpop.f32.mrb[8].mxu0 }
 0x350   : > { %v1277_v59 = vmax.f32 %v1203_v57, %v1273_v58  ;;  %v1966_v60 = vpop.f32.mrb[11].mxu1  ;;  %v1973_v61 = vpop.f32.mrb[9].mxu0 }
 0x352   : > { %1279 = vrot.lane.b32.xlu0 %v1277_v59, %s2128_s11 }
 0x353   : > { %v1354_v62 = vpop.f32.mrb[12].mxu1  ;;  %v1424_v63 = vpop.f32.mrb[10].mxu0 }
 0x354   : > { %v1428_v1 = vmax.f32 %v1354_v62, %v1424_v63  ;;  %v1980_v2 = vpop.f32.mrb[13].mxu1  ;;  %v1987_v3 = vpop.f32.mrb[11].mxu0 }
 0x356   : > { %1430 = vrot.lane.b32.xlu1 %v1428_v1, %s2131_s17 }
 0x357   : > { %v1505_v4 = vpop.f32.mrb[14].mxu1  ;;  %v1575_v5 = vpop.f32.mrb[12].mxu0 }
 0x358   : > { %v1579_v6 = vmax.f32 %v1505_v4, %v1575_v5  ;;  %v1994_v9 = vpop.f32.mrb[15].mxu1  ;;  %v2001_v10 = vpop.f32.mrb[13].mxu0 }
 0x35a   : > { %1581 = vrot.lane.b32.xlu0 %v1579_v6, %s2132_s19 }
 0x35b   : > { %v1656_v11 = vpop.f32.mrb[16].mxu1  ;;  %v1726_v12 = vpop.f32.mrb[14].mxu0 }
 0x35c   : > { %v1730_v13 = vmax.f32 %v1656_v11, %v1726_v12  ;;  %v2008_v14 = vpop.f32.mrb[17].mxu1  ;;  %v2015_v15 = vpop.f32.mrb[15].mxu0 }
 0x35e   : > { %1732 = vrot.lane.b32.xlu1 %v1730_v13, %s2133_s20 }
 0x3b8   : > { %v823_v7 = vpop.permute.xlu1 %822 }
 0x3b9   : > { %826 = vst.msk [vmem:[%s2375_s14] sm:$0xff] %vm825_vm14, %v823_v7 }
 0x3bc   : > { %v974_v8 = vpop.permute.xlu0 %973 }
 0x3bd   : > { %977 = vst.msk [vmem:[%s2375_s14] sm:$0xff] %vm976_vm8, %v974_v8 }
 0x3c0   : > { %v1125_v16 = vpop.permute.xlu1 %1124 }
 0x3c1   : > { %1128 = vst.msk [vmem:[%s2375_s14] sm:$0xff] %vm1127_vm13, %v1125_v16 }
 0x3c4   : > { %v1280_v17 = vpop.permute.xlu0 %1279 }
 0x3c5   : > { %1283 = vst.msk [vmem:[%s2375_s14] sm:$0xff] %vm1282_vm0, %v1280_v17 }
 0x3c8   : > { %v1431_v18 = vpop.permute.xlu1 %1430 }
 0x3c9   : > { %1434 = vst.msk [vmem:[%s2375_s14] sm:$0xff] %vm1433_vm15, %v1431_v18 }
 0x3cc   : > { %v1582_v19 = vpop.permute.xlu0 %1581 }
 0x3cd   : > { %1585 = vst.msk [vmem:[%s2375_s14] sm:$0xff] %vm1584_vm5, %v1582_v19 }
 0x3d0   : > { %v1733_v20 = vpop.permute.xlu1 %1732 }
 0x3d1   : > { %1736 = vst.msk [vmem:[%s2375_s14] sm:$0xff] %vm1735_vm12, %v1733_v20 }
 0x3d2 PF: > { %s14_s15 = sadd.s32 1, %s2111_s15  }
 0x3d3   : > { %p11_p4 = scmp.ge.s32.totalorder %s14_s15, 4  }
 0x3d5   :  { %13 = sbr.rel (!%p11_p4) target bundleno = 1 (0x1), region = 66 }

</bundles_post_ra>
